<compile_context>
chip_gen: v7x
topology: tpu7x:2x2x1
jax: 0.10.0
libtpu: 0.0.40
codegen_flags: <defaults>
</compile_context>

<pallas_src>
import functools
import math

import jax
import jax.numpy as jnp
from jax.experimental import pallas as pl
from jax.experimental.pallas import tpu as pltpu


# ---------------------------------------------------------------------------
# In-kernel helpers (traced Python, fully unrolled)
# ---------------------------------------------------------------------------

def _layer_norm(y, g, b, eps=1e-5):
    # PyTorch LayerNorm: biased variance, eps inside the sqrt.
    mu = jnp.mean(y, axis=-1, keepdims=True)
    var = jnp.mean(jnp.square(y - mu), axis=-1, keepdims=True)
    return (y - mu) * jax.lax.rsqrt(var + eps) * g + b


def _heads_attend(q, k, v, wo_t_ref, nhead, want_attn=False):
    """Multi-head attention for one batch element.

    q: (Lq, D) (already scaled by 1/sqrt(hd)), k/v: (Lk, D).
    Returns sum_h softmax(q_h k_h^T) v_h @ Wo_t[h*hd:(h+1)*hd, :]
    (== concat(heads) @ Wo^T, without the output bias), and optionally the
    head-averaged attention weights (Lq, Lk).
    """
    Lq, D = q.shape
    hd = D // nhead
    # contract last dim of both operands (q . k over head_dim) -> no transpose
    dn = (((1,), (1,)), ((), ()))
    proj = None
    attn_acc = None
    for h in range(nhead):
        lo, hi = h * hd, (h + 1) * hd
        s = jax.lax.dot_general(q[:, lo:hi], k[:, lo:hi], dimension_numbers=dn,
                                preferred_element_type=jnp.float32)          # (Lq, Lk)
        m = jnp.max(s, axis=-1, keepdims=True)
        e = jnp.exp(s - m)
        p = e / jnp.sum(e, axis=-1, keepdims=True)                            # (Lq, Lk)
        o_h = jnp.dot(p, v[:, lo:hi], preferred_element_type=jnp.float32)     # (Lq, hd)
        c = jnp.dot(o_h, wo_t_ref[lo:hi, :],
                    preferred_element_type=jnp.float32)                       # (Lq, D)
        proj = c if proj is None else proj + c
        if want_attn:
            attn_acc = p if attn_acc is None else attn_acc + p
    if want_attn:
        return proj, attn_acc * (1.0 / nhead)
    return proj


# ---------------------------------------------------------------------------
# Fused decoder-layer kernel (one batch element per grid step)
# ---------------------------------------------------------------------------

def _decoder_layer_kernel(
    # data (blocked per batch)
    tgt_ref, mem_ref, qpos_ref, kpos_ref,
    # self-attention params
    sa_wqk_ref, sa_bqk_ref, sa_wv_ref, sa_bv_ref, sa_wo_ref, sa_bo_ref,
    n1g_ref, n1b_ref,
    # cross-attention params
    ca_wq_ref, ca_bq_ref, ca_wk_ref, ca_bk_ref, ca_wv_ref, ca_bv_ref,
    ca_wo_ref, ca_bo_ref, n2g_ref, n2b_ref,
    # FFN params
    w1_ref, b1_ref, w2_ref, b2_ref, n3g_ref, n3b_ref,
    # outputs
    out_ref, attn_ref,
    *, nhead, scale):

    D = tgt_ref.shape[-1]

    tgt = tgt_ref[0]      # (Lq, D)
    mem = mem_ref[0]      # (Lk, D)
    qpos = qpos_ref[0]    # (Lq, D)
    kpos = kpos_ref[0]    # (Lk, D)

    # ---- self attention + residual + norm1 --------------------------------
    xqk = tgt + qpos                                        # q == k input
    qk = jnp.dot(xqk, sa_wqk_ref[...],
                 preferred_element_type=jnp.float32) + sa_bqk_ref[...]   # (Lq, 2D)
    q_sa = qk[:, :D] * scale
    k_sa = qk[:, D:]
    v_sa = jnp.dot(tgt, sa_wv_ref[...],
                   preferred_element_type=jnp.float32) + sa_bv_ref[...]  # (Lq, D)
    sa_proj = _heads_attend(q_sa, k_sa, v_sa, sa_wo_ref, nhead)          # no attn output
    tgt1 = _layer_norm(tgt + sa_proj + sa_bo_ref[...], n1g_ref[...], n1b_ref[...])

    # ---- cross attention + residual + norm2 -------------------------------
    xq = tgt1 + qpos
    xk = mem + kpos
    q_ca = (jnp.dot(xq, ca_wq_ref[...],
                    preferred_element_type=jnp.float32) + ca_bq_ref[...]) * scale
    k_ca = jnp.dot(xk, ca_wk_ref[...],
                   preferred_element_type=jnp.float32) + ca_bk_ref[...]
    v_ca = jnp.dot(mem, ca_wv_ref[...],
                   preferred_element_type=jnp.float32) + ca_bv_ref[...]
    ca_proj, attn_mean = _heads_attend(q_ca, k_ca, v_ca, ca_wo_ref, nhead, want_attn=True)
    tgt2 = _layer_norm(tgt1 + ca_proj + ca_bo_ref[...], n2g_ref[...], n2b_ref[...])

    # ---- FFN (linear1 -> relu -> linear2) + residual + norm3 ---------------
    h = jnp.maximum(
        jnp.dot(tgt2, w1_ref[...], preferred_element_type=jnp.float32) + b1_ref[...],
        0.0)
    ff = jnp.dot(h, w2_ref[...], preferred_element_type=jnp.float32) + b2_ref[...]
    tgt3 = _layer_norm(tgt2 + ff, n3g_ref[...], n3b_ref[...])

    out_ref[0] = tgt3.astype(out_ref.dtype)
    attn_ref[0] = attn_mean.astype(attn_ref.dtype)


# ---------------------------------------------------------------------------
# Wrapper: TransformerDecoderLayer.forward_post (normalize_before=False)
# ---------------------------------------------------------------------------

def transformer_decoder_layer(params, tgt, memory, pos=None, query_pos=None):
    """tgt: (Lq, B, D); memory: (Lk, B, D); returns (tgt_out (Lq,B,D), attn (B,Lq,Lk))."""
    Lq, B, D = tgt.shape
    Lk = memory.shape[0]
    nhead = params["nhead"]
    hd = D // nhead
    scale = 1.0 / math.sqrt(hd)
    Dff = params["lin1_w"].shape[0]

    # batch-major so the kernel grid can be "parallel" over batch (v7x: 2 TCs)
    tgt_b = jnp.transpose(tgt, (1, 0, 2))
    mem_b = jnp.transpose(memory, (1, 0, 2))
    qpos_b = (jnp.transpose(query_pos, (1, 0, 2)) if query_pos is not None
              else jnp.zeros_like(tgt_b))
    kpos_b = (jnp.transpose(pos, (1, 0, 2)) if pos is not None
              else jnp.zeros_like(mem_b))

    # ---- weight preprocessing (tiny one-time glue; weights pre-transposed) ----
    sa_w, sa_b = params["sa_in_w"], params["sa_in_b"]
    sa_wqk_t = jnp.concatenate([sa_w[:D], sa_w[D:2 * D]], axis=0).T        # (D, 2D)
    sa_bqk = jnp.concatenate([sa_b[:D], sa_b[D:2 * D]]).reshape(1, 2 * D)
    sa_wv_t = sa_w[2 * D:].T                                               # (D, D)
    sa_bv = sa_b[2 * D:].reshape(1, D)
    sa_wo_t = params["sa_out_w"].T
    sa_bo = params["sa_out_b"].reshape(1, D)

    ca_w, ca_b = params["ca_in_w"], params["ca_in_b"]
    ca_wq_t, ca_wk_t, ca_wv_t = ca_w[:D].T, ca_w[D:2 * D].T, ca_w[2 * D:].T
    ca_bq = ca_b[:D].reshape(1, D)
    ca_bk = ca_b[D:2 * D].reshape(1, D)
    ca_bv = ca_b[2 * D:].reshape(1, D)
    ca_wo_t = params["ca_out_w"].T
    ca_bo = params["ca_out_b"].reshape(1, D)

    w1_t = params["lin1_w"].T                      # (D, Dff)
    b1 = params["lin1_b"].reshape(1, Dff)
    w2_t = params["lin2_w"].T                      # (Dff, D)
    b2 = params["lin2_b"].reshape(1, D)

    n1g, n1b = params["norm1_g"].reshape(1, D), params["norm1_b"].reshape(1, D)
    n2g, n2b = params["norm2_g"].reshape(1, D), params["norm2_b"].reshape(1, D)
    n3g, n3b = params["norm3_g"].reshape(1, D), params["norm3_b"].reshape(1, D)

    weights = (sa_wqk_t, sa_bqk, sa_wv_t, sa_bv, sa_wo_t, sa_bo, n1g, n1b,
               ca_wq_t, ca_bq, ca_wk_t, ca_bk, ca_wv_t, ca_bv, ca_wo_t, ca_bo, n2g, n2b,
               w1_t, b1, w2_t, b2, n3g, n3b)

    data_specs = [
        pl.BlockSpec((1, Lq, D), lambda b: (b, 0, 0)),   # tgt
        pl.BlockSpec((1, Lk, D), lambda b: (b, 0, 0)),   # memory
        pl.BlockSpec((1, Lq, D), lambda b: (b, 0, 0)),   # query_pos
        pl.BlockSpec((1, Lk, D), lambda b: (b, 0, 0)),   # pos
    ]
    # weights: whole-array blocks, same block every grid step (no re-DMA)
    weight_specs = [pl.BlockSpec(w.shape, lambda b: (0, 0)) for w in weights]

    kernel = functools.partial(_decoder_layer_kernel, nhead=nhead, scale=scale)

    out_b, attn = pl.pallas_call(
        kernel,
        grid=(B,),
        in_specs=data_specs + weight_specs,
        out_specs=[pl.BlockSpec((1, Lq, D), lambda b: (b, 0, 0)),
                   pl.BlockSpec((1, Lq, Lk), lambda b: (b, 0, 0))],
        out_shape=(jax.ShapeDtypeStruct((B, Lq, D), jnp.float32),
                   jax.ShapeDtypeStruct((B, Lq, Lk), jnp.float32)),
        compiler_params=pltpu.CompilerParams(dimension_semantics=("parallel",)),
    )(tgt_b, mem_b, qpos_b, kpos_b, *weights)

    return jnp.transpose(out_b, (1, 0, 2)), attn


# ---------------------------------------------------------------------------
# Deterministic parameter init (same structure as nn.TransformerDecoderLayer)
# ---------------------------------------------------------------------------

def init_params(key, d_model, nhead, dim_ff):
    ks = jax.random.split(key, 12)
    s = 0.05
    return {
        "nhead": nhead,
        # self-attention
        "sa_in_w": s * jax.random.normal(ks[0], (3 * d_model, d_model), jnp.float32),
        "sa_in_b": s * jax.random.normal(ks[1], (3 * d_model,), jnp.float32),
        "sa_out_w": s * jax.random.normal(ks[2], (d_model, d_model), jnp.float32),
        "sa_out_b": s * jax.random.normal(ks[3], (d_model,), jnp.float32),
        # cross-attention
        "ca_in_w": s * jax.random.normal(ks[4], (3 * d_model, d_model), jnp.float32),
        "ca_in_b": s * jax.random.normal(ks[5], (3 * d_model,), jnp.float32),
        "ca_out_w": s * jax.random.normal(ks[6], (d_model, d_model), jnp.float32),
        "ca_out_b": s * jax.random.normal(ks[7], (d_model,), jnp.float32),
        # FFN
        "lin1_w": s * jax.random.normal(ks[8], (dim_ff, d_model), jnp.float32),
        "lin1_b": s * jax.random.normal(ks[9], (dim_ff,), jnp.float32),
        "lin2_w": s * jax.random.normal(ks[10], (d_model, dim_ff), jnp.float32),
        "lin2_b": s * jax.random.normal(ks[11], (d_model,), jnp.float32),
        # LayerNorms (PyTorch default init)
        "norm1_g": jnp.ones((d_model,), jnp.float32),
        "norm1_b": jnp.zeros((d_model,), jnp.float32),
        "norm2_g": jnp.ones((d_model,), jnp.float32),
        "norm2_b": jnp.zeros((d_model,), jnp.float32),
        "norm3_g": jnp.ones((d_model,), jnp.float32),
        "norm3_b": jnp.zeros((d_model,), jnp.float32),
    }


# ---------------------------------------------------------------------------
# Main
# ---------------------------------------------------------------------------

if __name__ == "__main__":
    d_model, nhead, dim_ff = 32, 4, 64
    L_tgt, L_mem, batch = 8, 10, 2

    key = jax.random.PRNGKey(0)
    k_p, k_t, k_m, k_pos, k_qpos = jax.random.split(key, 5)

    params = init_params(k_p, d_model, nhead, dim_ff)
    tgt = jax.random.normal(k_t, (L_tgt, batch, d_model), jnp.float32)
    memory = jax.random.normal(k_m, (L_mem, batch, d_model), jnp.float32)
    pos = 0.1 * jax.random.normal(k_pos, (L_mem, batch, d_model), jnp.float32)
    query_pos = 0.1 * jax.random.normal(k_qpos, (L_tgt, batch, d_model), jnp.float32)

    out, attn_maps = transformer_decoder_layer(params, tgt, memory, pos, query_pos)
    out = jax.block_until_ready(out)
    attn_maps = jax.block_until_ready(attn_maps)

    assert out.shape == (L_tgt, batch, d_model)
    assert attn_maps.shape == (batch, L_tgt, L_mem)
    assert bool(jnp.all(jnp.isfinite(out)))
    # attention weights rows should sum to ~1 (head-averaged softmax)
    assert bool(jnp.allclose(jnp.sum(attn_maps, axis=-1), 1.0, atol=1e-4))

    print("KERNEL_OK")
</pallas_src>

<mosaic_0001>
module attributes {stable_mosaic.version = 11 : i64} {
  func.func @_decoder_layer_kernel(%arg0: i32, %arg1: memref<1x8x32xf32, #tpu.memory_space<vmem>>, %arg2: memref<1x10x32xf32, #tpu.memory_space<vmem>>, %arg3: memref<1x8x32xf32, #tpu.memory_space<vmem>>, %arg4: memref<1x10x32xf32, #tpu.memory_space<vmem>>, %arg5: memref<32x64xf32, #tpu.memory_space<vmem>>, %arg6: memref<1x64xf32, #tpu.memory_space<vmem>>, %arg7: memref<32x32xf32, #tpu.memory_space<vmem>>, %arg8: memref<1x32xf32, #tpu.memory_space<vmem>>, %arg9: memref<32x32xf32, #tpu.memory_space<vmem>>, %arg10: memref<1x32xf32, #tpu.memory_space<vmem>>, %arg11: memref<1x32xf32, #tpu.memory_space<vmem>>, %arg12: memref<1x32xf32, #tpu.memory_space<vmem>>, %arg13: memref<32x32xf32, #tpu.memory_space<vmem>>, %arg14: memref<1x32xf32, #tpu.memory_space<vmem>>, %arg15: memref<32x32xf32, #tpu.memory_space<vmem>>, %arg16: memref<1x32xf32, #tpu.memory_space<vmem>>, %arg17: memref<32x32xf32, #tpu.memory_space<vmem>>, %arg18: memref<1x32xf32, #tpu.memory_space<vmem>>, %arg19: memref<32x32xf32, #tpu.memory_space<vmem>>, %arg20: memref<1x32xf32, #tpu.memory_space<vmem>>, %arg21: memref<1x32xf32, #tpu.memory_space<vmem>>, %arg22: memref<1x32xf32, #tpu.memory_space<vmem>>, %arg23: memref<32x64xf32, #tpu.memory_space<vmem>>, %arg24: memref<1x64xf32, #tpu.memory_space<vmem>>, %arg25: memref<64x32xf32, #tpu.memory_space<vmem>>, %arg26: memref<1x32xf32, #tpu.memory_space<vmem>>, %arg27: memref<1x32xf32, #tpu.memory_space<vmem>>, %arg28: memref<1x32xf32, #tpu.memory_space<vmem>>, %arg29: memref<1x8x32xf32, #tpu.memory_space<vmem>>, %arg30: memref<1x8x10xf32, #tpu.memory_space<vmem>>) attributes {dimension_semantics = [#tpu.dimension_semantics<parallel>], iteration_bounds = array<i64: 2>, scalar_prefetch = 0 : i64, scratch_operands = 0 : i64, tpu.core_type = #tpu.core_type<tc>, window_params = [{transform_indices = @transform_0, window_bounds = array<i64: 1, 8, 32>}, {transform_indices = @transform_1, window_bounds = array<i64: 1, 10, 32>}, {transform_indices = @transform_2, window_bounds = array<i64: 1, 8, 32>}, {transform_indices = @transform_3, window_bounds = array<i64: 1, 10, 32>}, {pipeline_mode = #tpu.pipeline_mode<synchronous>, transform_indices = @transform_4, window_bounds = array<i64: 32, 64>}, {pipeline_mode = #tpu.pipeline_mode<synchronous>, transform_indices = @transform_5, window_bounds = array<i64: 1, 64>}, {pipeline_mode = #tpu.pipeline_mode<synchronous>, transform_indices = @transform_6, window_bounds = array<i64: 32, 32>}, {pipeline_mode = #tpu.pipeline_mode<synchronous>, transform_indices = @transform_7, window_bounds = array<i64: 1, 32>}, {pipeline_mode = #tpu.pipeline_mode<synchronous>, transform_indices = @transform_8, window_bounds = array<i64: 32, 32>}, {pipeline_mode = #tpu.pipeline_mode<synchronous>, transform_indices = @transform_9, window_bounds = array<i64: 1, 32>}, {pipeline_mode = #tpu.pipeline_mode<synchronous>, transform_indices = @transform_10, window_bounds = array<i64: 1, 32>}, {pipeline_mode = #tpu.pipeline_mode<synchronous>, transform_indices = @transform_11, window_bounds = array<i64: 1, 32>}, {pipeline_mode = #tpu.pipeline_mode<synchronous>, transform_indices = @transform_12, window_bounds = array<i64: 32, 32>}, {pipeline_mode = #tpu.pipeline_mode<synchronous>, transform_indices = @transform_13, window_bounds = array<i64: 1, 32>}, {pipeline_mode = #tpu.pipeline_mode<synchronous>, transform_indices = @transform_14, window_bounds = array<i64: 32, 32>}, {pipeline_mode = #tpu.pipeline_mode<synchronous>, transform_indices = @transform_15, window_bounds = array<i64: 1, 32>}, {pipeline_mode = #tpu.pipeline_mode<synchronous>, transform_indices = @transform_16, window_bounds = array<i64: 32, 32>}, {pipeline_mode = #tpu.pipeline_mode<synchronous>, transform_indices = @transform_17, window_bounds = array<i64: 1, 32>}, {pipeline_mode = #tpu.pipeline_mode<synchronous>, transform_indices = @transform_18, window_bounds = array<i64: 32, 32>}, {pipeline_mode = #tpu.pipeline_mode<synchronous>, transform_indices = @transform_19, window_bounds = array<i64: 1, 32>}, {pipeline_mode = #tpu.pipeline_mode<synchronous>, transform_indices = @transform_20, window_bounds = array<i64: 1, 32>}, {pipeline_mode = #tpu.pipeline_mode<synchronous>, transform_indices = @transform_21, window_bounds = array<i64: 1, 32>}, {pipeline_mode = #tpu.pipeline_mode<synchronous>, transform_indices = @transform_22, window_bounds = array<i64: 32, 64>}, {pipeline_mode = #tpu.pipeline_mode<synchronous>, transform_indices = @transform_23, window_bounds = array<i64: 1, 64>}, {pipeline_mode = #tpu.pipeline_mode<synchronous>, transform_indices = @transform_24, window_bounds = array<i64: 64, 32>}, {pipeline_mode = #tpu.pipeline_mode<synchronous>, transform_indices = @transform_25, window_bounds = array<i64: 1, 32>}, {pipeline_mode = #tpu.pipeline_mode<synchronous>, transform_indices = @transform_26, window_bounds = array<i64: 1, 32>}, {pipeline_mode = #tpu.pipeline_mode<synchronous>, transform_indices = @transform_27, window_bounds = array<i64: 1, 32>}, {transform_indices = @transform_28, window_bounds = array<i64: 1, 8, 32>}, {transform_indices = @transform_29, window_bounds = array<i64: 1, 8, 10>}]} {
    %c0 = arith.constant 0 : index
    %c0_0 = arith.constant 0 : index
    %c0_1 = arith.constant 0 : index
    %0 = vector.load %arg1[%c0, %c0_0, %c0_1] : memref<1x8x32xf32, #tpu.memory_space<vmem>>, vector<1x8x32xf32>
    %1 = vector.shape_cast %0 : vector<1x8x32xf32> to vector<8x32xf32>
    %c0_2 = arith.constant 0 : index
    %c0_3 = arith.constant 0 : index
    %c0_4 = arith.constant 0 : index
    %2 = vector.load %arg2[%c0_2, %c0_3, %c0_4] : memref<1x10x32xf32, #tpu.memory_space<vmem>>, vector<1x10x32xf32>
    %3 = vector.shape_cast %2 : vector<1x10x32xf32> to vector<10x32xf32>
    %c0_5 = arith.constant 0 : index
    %c0_6 = arith.constant 0 : index
    %c0_7 = arith.constant 0 : index
    %4 = vector.load %arg3[%c0_5, %c0_6, %c0_7] : memref<1x8x32xf32, #tpu.memory_space<vmem>>, vector<1x8x32xf32>
    %5 = vector.shape_cast %4 : vector<1x8x32xf32> to vector<8x32xf32>
    %c0_8 = arith.constant 0 : index
    %c0_9 = arith.constant 0 : index
    %c0_10 = arith.constant 0 : index
    %6 = vector.load %arg4[%c0_8, %c0_9, %c0_10] : memref<1x10x32xf32, #tpu.memory_space<vmem>>, vector<1x10x32xf32>
    %7 = vector.shape_cast %6 : vector<1x10x32xf32> to vector<10x32xf32>
    %8 = arith.addf %1, %5 : vector<8x32xf32>
    %c0_11 = arith.constant 0 : index
    %c0_12 = arith.constant 0 : index
    %9 = vector.load %arg5[%c0_11, %c0_12] : memref<32x64xf32, #tpu.memory_space<vmem>>, vector<32x64xf32>
    %cst = arith.constant dense<0.000000e+00> : vector<8x64xf32>
    %10 = tpu.matmul %8, %9, %cst {dimension_numbers = #tpu.dot_dimension_numbers<[1], [0], [0], [1], [0, 0, 1, 1], [], []>} : vector<8x32xf32>, vector<32x64xf32>, vector<8x64xf32> -> vector<8x64xf32>
    %c0_13 = arith.constant 0 : index
    %c0_14 = arith.constant 0 : index
    %11 = vector.load %arg6[%c0_13, %c0_14] : memref<1x64xf32, #tpu.memory_space<vmem>>, vector<1x64xf32>
    %12 = vector.broadcast %11 : vector<1x64xf32> to vector<8x64xf32>
    %13 = arith.addf %10, %12 : vector<8x64xf32>
    %14 = vector.extract_strided_slice %13 {offsets = [0, 0], sizes = [8, 32], strides = [1, 1]} : vector<8x64xf32> to vector<8x32xf32>
    %cst_15 = arith.constant 0.353553385 : f32
    %15 = vector.broadcast %cst_15 : f32 to vector<8x32xf32>
    %16 = arith.mulf %14, %15 : vector<8x32xf32>
    %17 = vector.extract_strided_slice %13 {offsets = [0, 32], sizes = [8, 32], strides = [1, 1]} : vector<8x64xf32> to vector<8x32xf32>
    %c0_16 = arith.constant 0 : index
    %c0_17 = arith.constant 0 : index
    %18 = vector.load %arg7[%c0_16, %c0_17] : memref<32x32xf32, #tpu.memory_space<vmem>>, vector<32x32xf32>
    %cst_18 = arith.constant dense<0.000000e+00> : vector<8x32xf32>
    %19 = tpu.matmul %1, %18, %cst_18 {dimension_numbers = #tpu.dot_dimension_numbers<[1], [0], [0], [1], [0, 0, 1, 1], [], []>} : vector<8x32xf32>, vector<32x32xf32>, vector<8x32xf32> -> vector<8x32xf32>
    %c0_19 = arith.constant 0 : index
    %c0_20 = arith.constant 0 : index
    %20 = vector.load %arg8[%c0_19, %c0_20] : memref<1x32xf32, #tpu.memory_space<vmem>>, vector<1x32xf32>
    %21 = vector.broadcast %20 : vector<1x32xf32> to vector<8x32xf32>
    %22 = arith.addf %19, %21 : vector<8x32xf32>
    %23 = vector.extract_strided_slice %16 {offsets = [0, 0], sizes = [8, 8], strides = [1, 1]} : vector<8x32xf32> to vector<8x8xf32>
    %24 = vector.extract_strided_slice %17 {offsets = [0, 0], sizes = [8, 8], strides = [1, 1]} : vector<8x32xf32> to vector<8x8xf32>
    %cst_21 = arith.constant dense<0.000000e+00> : vector<8x8xf32>
    %25 = tpu.matmul %23, %24, %cst_21 {dimension_numbers = #tpu.dot_dimension_numbers<[1], [1], [0], [0], [0, 0, 1, 0], [], []>} : vector<8x8xf32>, vector<8x8xf32>, vector<8x8xf32> -> vector<8x8xf32>
    %cst_22 = arith.constant dense<0xFF800000> : vector<8xf32>
    %26 = vector.multi_reduction <maximumf>, %25, %cst_22 [1] : vector<8x8xf32> to vector<8xf32>
    %27 = vector.shape_cast %26 : vector<8xf32> to vector<8x1xf32>
    %28 = vector.broadcast %27 : vector<8x1xf32> to vector<8x8xf32>
    %29 = arith.subf %25, %28 : vector<8x8xf32>
    %30 = math.exp %29 : vector<8x8xf32>
    %cst_23 = arith.constant dense<0.000000e+00> : vector<8xf32>
    %31 = vector.multi_reduction <add>, %30, %cst_23 [1] : vector<8x8xf32> to vector<8xf32>
    %32 = vector.shape_cast %31 : vector<8xf32> to vector<8x1xf32>
    %33 = vector.broadcast %32 : vector<8x1xf32> to vector<8x8xf32>
    %34 = arith.divf %30, %33 : vector<8x8xf32>
    %35 = vector.extract_strided_slice %22 {offsets = [0, 0], sizes = [8, 8], strides = [1, 1]} : vector<8x32xf32> to vector<8x8xf32>
    %cst_24 = arith.constant dense<0.000000e+00> : vector<8x8xf32>
    %36 = tpu.matmul %34, %35, %cst_24 {dimension_numbers = #tpu.dot_dimension_numbers<[1], [0], [0], [1], [0, 0, 1, 1], [], []>} : vector<8x8xf32>, vector<8x8xf32>, vector<8x8xf32> -> vector<8x8xf32>
    %c0_25 = arith.constant 0 : index
    %c0_26 = arith.constant 0 : index
    %37 = vector.load %arg9[%c0_25, %c0_26] : memref<32x32xf32, #tpu.memory_space<vmem>>, vector<8x32xf32>
    %cst_27 = arith.constant dense<0.000000e+00> : vector<8x32xf32>
    %38 = tpu.matmul %36, %37, %cst_27 {dimension_numbers = #tpu.dot_dimension_numbers<[1], [0], [0], [1], [0, 0, 1, 1], [], []>} : vector<8x8xf32>, vector<8x32xf32>, vector<8x32xf32> -> vector<8x32xf32>
    %39 = vector.extract_strided_slice %16 {offsets = [0, 8], sizes = [8, 8], strides = [1, 1]} : vector<8x32xf32> to vector<8x8xf32>
    %40 = vector.extract_strided_slice %17 {offsets = [0, 8], sizes = [8, 8], strides = [1, 1]} : vector<8x32xf32> to vector<8x8xf32>
    %cst_28 = arith.constant dense<0.000000e+00> : vector<8x8xf32>
    %41 = tpu.matmul %39, %40, %cst_28 {dimension_numbers = #tpu.dot_dimension_numbers<[1], [1], [0], [0], [0, 0, 1, 0], [], []>} : vector<8x8xf32>, vector<8x8xf32>, vector<8x8xf32> -> vector<8x8xf32>
    %cst_29 = arith.constant dense<0xFF800000> : vector<8xf32>
    %42 = vector.multi_reduction <maximumf>, %41, %cst_29 [1] : vector<8x8xf32> to vector<8xf32>
    %43 = vector.shape_cast %42 : vector<8xf32> to vector<8x1xf32>
    %44 = vector.broadcast %43 : vector<8x1xf32> to vector<8x8xf32>
    %45 = arith.subf %41, %44 : vector<8x8xf32>
    %46 = math.exp %45 : vector<8x8xf32>
    %cst_30 = arith.constant dense<0.000000e+00> : vector<8xf32>
    %47 = vector.multi_reduction <add>, %46, %cst_30 [1] : vector<8x8xf32> to vector<8xf32>
    %48 = vector.shape_cast %47 : vector<8xf32> to vector<8x1xf32>
    %49 = vector.broadcast %48 : vector<8x1xf32> to vector<8x8xf32>
    %50 = arith.divf %46, %49 : vector<8x8xf32>
    %51 = vector.extract_strided_slice %22 {offsets = [0, 8], sizes = [8, 8], strides = [1, 1]} : vector<8x32xf32> to vector<8x8xf32>
    %cst_31 = arith.constant dense<0.000000e+00> : vector<8x8xf32>
    %52 = tpu.matmul %50, %51, %cst_31 {dimension_numbers = #tpu.dot_dimension_numbers<[1], [0], [0], [1], [0, 0, 1, 1], [], []>} : vector<8x8xf32>, vector<8x8xf32>, vector<8x8xf32> -> vector<8x8xf32>
    %c8 = arith.constant 8 : index
    %c0_32 = arith.constant 0 : index
    %53 = vector.load %arg9[%c8, %c0_32] : memref<32x32xf32, #tpu.memory_space<vmem>>, vector<8x32xf32>
    %cst_33 = arith.constant dense<0.000000e+00> : vector<8x32xf32>
    %54 = tpu.matmul %52, %53, %cst_33 {dimension_numbers = #tpu.dot_dimension_numbers<[1], [0], [0], [1], [0, 0, 1, 1], [], []>} : vector<8x8xf32>, vector<8x32xf32>, vector<8x32xf32> -> vector<8x32xf32>
    %55 = arith.addf %38, %54 : vector<8x32xf32>
    %56 = vector.extract_strided_slice %16 {offsets = [0, 16], sizes = [8, 8], strides = [1, 1]} : vector<8x32xf32> to vector<8x8xf32>
    %57 = vector.extract_strided_slice %17 {offsets = [0, 16], sizes = [8, 8], strides = [1, 1]} : vector<8x32xf32> to vector<8x8xf32>
    %cst_34 = arith.constant dense<0.000000e+00> : vector<8x8xf32>
    %58 = tpu.matmul %56, %57, %cst_34 {dimension_numbers = #tpu.dot_dimension_numbers<[1], [1], [0], [0], [0, 0, 1, 0], [], []>} : vector<8x8xf32>, vector<8x8xf32>, vector<8x8xf32> -> vector<8x8xf32>
    %cst_35 = arith.constant dense<0xFF800000> : vector<8xf32>
    %59 = vector.multi_reduction <maximumf>, %58, %cst_35 [1] : vector<8x8xf32> to vector<8xf32>
    %60 = vector.shape_cast %59 : vector<8xf32> to vector<8x1xf32>
    %61 = vector.broadcast %60 : vector<8x1xf32> to vector<8x8xf32>
    %62 = arith.subf %58, %61 : vector<8x8xf32>
    %63 = math.exp %62 : vector<8x8xf32>
    %cst_36 = arith.constant dense<0.000000e+00> : vector<8xf32>
    %64 = vector.multi_reduction <add>, %63, %cst_36 [1] : vector<8x8xf32> to vector<8xf32>
    %65 = vector.shape_cast %64 : vector<8xf32> to vector<8x1xf32>
    %66 = vector.broadcast %65 : vector<8x1xf32> to vector<8x8xf32>
    %67 = arith.divf %63, %66 : vector<8x8xf32>
    %68 = vector.extract_strided_slice %22 {offsets = [0, 16], sizes = [8, 8], strides = [1, 1]} : vector<8x32xf32> to vector<8x8xf32>
    %cst_37 = arith.constant dense<0.000000e+00> : vector<8x8xf32>
    %69 = tpu.matmul %67, %68, %cst_37 {dimension_numbers = #tpu.dot_dimension_numbers<[1], [0], [0], [1], [0, 0, 1, 1], [], []>} : vector<8x8xf32>, vector<8x8xf32>, vector<8x8xf32> -> vector<8x8xf32>
    %c16 = arith.constant 16 : index
    %c0_38 = arith.constant 0 : index
    %70 = vector.load %arg9[%c16, %c0_38] : memref<32x32xf32, #tpu.memory_space<vmem>>, vector<8x32xf32>
    %cst_39 = arith.constant dense<0.000000e+00> : vector<8x32xf32>
    %71 = tpu.matmul %69, %70, %cst_39 {dimension_numbers = #tpu.dot_dimension_numbers<[1], [0], [0], [1], [0, 0, 1, 1], [], []>} : vector<8x8xf32>, vector<8x32xf32>, vector<8x32xf32> -> vector<8x32xf32>
    %72 = arith.addf %55, %71 : vector<8x32xf32>
    %73 = vector.extract_strided_slice %16 {offsets = [0, 24], sizes = [8, 8], strides = [1, 1]} : vector<8x32xf32> to vector<8x8xf32>
    %74 = vector.extract_strided_slice %17 {offsets = [0, 24], sizes = [8, 8], strides = [1, 1]} : vector<8x32xf32> to vector<8x8xf32>
    %cst_40 = arith.constant dense<0.000000e+00> : vector<8x8xf32>
    %75 = tpu.matmul %73, %74, %cst_40 {dimension_numbers = #tpu.dot_dimension_numbers<[1], [1], [0], [0], [0, 0, 1, 0], [], []>} : vector<8x8xf32>, vector<8x8xf32>, vector<8x8xf32> -> vector<8x8xf32>
    %cst_41 = arith.constant dense<0xFF800000> : vector<8xf32>
    %76 = vector.multi_reduction <maximumf>, %75, %cst_41 [1] : vector<8x8xf32> to vector<8xf32>
    %77 = vector.shape_cast %76 : vector<8xf32> to vector<8x1xf32>
    %78 = vector.broadcast %77 : vector<8x1xf32> to vector<8x8xf32>
    %79 = arith.subf %75, %78 : vector<8x8xf32>
    %80 = math.exp %79 : vector<8x8xf32>
    %cst_42 = arith.constant dense<0.000000e+00> : vector<8xf32>
    %81 = vector.multi_reduction <add>, %80, %cst_42 [1] : vector<8x8xf32> to vector<8xf32>
    %82 = vector.shape_cast %81 : vector<8xf32> to vector<8x1xf32>
    %83 = vector.broadcast %82 : vector<8x1xf32> to vector<8x8xf32>
    %84 = arith.divf %80, %83 : vector<8x8xf32>
    %85 = vector.extract_strided_slice %22 {offsets = [0, 24], sizes = [8, 8], strides = [1, 1]} : vector<8x32xf32> to vector<8x8xf32>
    %cst_43 = arith.constant dense<0.000000e+00> : vector<8x8xf32>
    %86 = tpu.matmul %84, %85, %cst_43 {dimension_numbers = #tpu.dot_dimension_numbers<[1], [0], [0], [1], [0, 0, 1, 1], [], []>} : vector<8x8xf32>, vector<8x8xf32>, vector<8x8xf32> -> vector<8x8xf32>
    %c24 = arith.constant 24 : index
    %c0_44 = arith.constant 0 : index
    %87 = vector.load %arg9[%c24, %c0_44] : memref<32x32xf32, #tpu.memory_space<vmem>>, vector<8x32xf32>
    %cst_45 = arith.constant dense<0.000000e+00> : vector<8x32xf32>
    %88 = tpu.matmul %86, %87, %cst_45 {dimension_numbers = #tpu.dot_dimension_numbers<[1], [0], [0], [1], [0, 0, 1, 1], [], []>} : vector<8x8xf32>, vector<8x32xf32>, vector<8x32xf32> -> vector<8x32xf32>
    %89 = arith.addf %72, %88 : vector<8x32xf32>
    %90 = arith.addf %1, %89 : vector<8x32xf32>
    %c0_46 = arith.constant 0 : index
    %c0_47 = arith.constant 0 : index
    %91 = vector.load %arg10[%c0_46, %c0_47] : memref<1x32xf32, #tpu.memory_space<vmem>>, vector<1x32xf32>
    %92 = vector.broadcast %91 : vector<1x32xf32> to vector<8x32xf32>
    %93 = arith.addf %90, %92 : vector<8x32xf32>
    %c0_48 = arith.constant 0 : index
    %c0_49 = arith.constant 0 : index
    %94 = vector.load %arg11[%c0_48, %c0_49] : memref<1x32xf32, #tpu.memory_space<vmem>>, vector<1x32xf32>
    %c0_50 = arith.constant 0 : index
    %c0_51 = arith.constant 0 : index
    %95 = vector.load %arg12[%c0_50, %c0_51] : memref<1x32xf32, #tpu.memory_space<vmem>>, vector<1x32xf32>
    %cst_52 = arith.constant dense<0.000000e+00> : vector<8xf32>
    %96 = vector.multi_reduction <add>, %93, %cst_52 [1] : vector<8x32xf32> to vector<8xf32>
    %97 = vector.shape_cast %96 : vector<8xf32> to vector<8x1xf32>
    %cst_53 = arith.constant 3.200000e+01 : f32
    %98 = vector.broadcast %cst_53 : f32 to vector<8x1xf32>
    %99 = arith.divf %97, %98 : vector<8x1xf32>
    %100 = vector.broadcast %99 : vector<8x1xf32> to vector<8x32xf32>
    %101 = arith.subf %93, %100 : vector<8x32xf32>
    %102 = arith.mulf %101, %101 : vector<8x32xf32>
    %cst_54 = arith.constant dense<0.000000e+00> : vector<8xf32>
    %103 = vector.multi_reduction <add>, %102, %cst_54 [1] : vector<8x32xf32> to vector<8xf32>
    %104 = vector.shape_cast %103 : vector<8xf32> to vector<8x1xf32>
    %cst_55 = arith.constant 3.200000e+01 : f32
    %105 = vector.broadcast %cst_55 : f32 to vector<8x1xf32>
    %106 = arith.divf %104, %105 : vector<8x1xf32>
    %107 = vector.broadcast %99 : vector<8x1xf32> to vector<8x32xf32>
    %108 = arith.subf %93, %107 : vector<8x32xf32>
    %cst_56 = arith.constant 9.99999974E-6 : f32
    %109 = vector.broadcast %cst_56 : f32 to vector<8x1xf32>
    %110 = arith.addf %106, %109 : vector<8x1xf32>
    %111 = math.rsqrt %110 : vector<8x1xf32>
    %112 = vector.broadcast %111 : vector<8x1xf32> to vector<8x32xf32>
    %113 = arith.mulf %108, %112 : vector<8x32xf32>
    %114 = vector.broadcast %94 : vector<1x32xf32> to vector<8x32xf32>
    %115 = arith.mulf %113, %114 : vector<8x32xf32>
    %116 = vector.broadcast %95 : vector<1x32xf32> to vector<8x32xf32>
    %117 = arith.addf %115, %116 : vector<8x32xf32>
    %118 = arith.addf %117, %5 : vector<8x32xf32>
    %119 = arith.addf %3, %7 : vector<10x32xf32>
    %c0_57 = arith.constant 0 : index
    %c0_58 = arith.constant 0 : index
    %120 = vector.load %arg13[%c0_57, %c0_58] : memref<32x32xf32, #tpu.memory_space<vmem>>, vector<32x32xf32>
    %cst_59 = arith.constant dense<0.000000e+00> : vector<8x32xf32>
    %121 = tpu.matmul %118, %120, %cst_59 {dimension_numbers = #tpu.dot_dimension_numbers<[1], [0], [0], [1], [0, 0, 1, 1], [], []>} : vector<8x32xf32>, vector<32x32xf32>, vector<8x32xf32> -> vector<8x32xf32>
    %c0_60 = arith.constant 0 : index
    %c0_61 = arith.constant 0 : index
    %122 = vector.load %arg14[%c0_60, %c0_61] : memref<1x32xf32, #tpu.memory_space<vmem>>, vector<1x32xf32>
    %123 = vector.broadcast %122 : vector<1x32xf32> to vector<8x32xf32>
    %124 = arith.addf %121, %123 : vector<8x32xf32>
    %cst_62 = arith.constant 0.353553385 : f32
    %125 = vector.broadcast %cst_62 : f32 to vector<8x32xf32>
    %126 = arith.mulf %124, %125 : vector<8x32xf32>
    %c0_63 = arith.constant 0 : index
    %c0_64 = arith.constant 0 : index
    %127 = vector.load %arg15[%c0_63, %c0_64] : memref<32x32xf32, #tpu.memory_space<vmem>>, vector<32x32xf32>
    %cst_65 = arith.constant dense<0.000000e+00> : vector<10x32xf32>
    %128 = tpu.matmul %119, %127, %cst_65 {dimension_numbers = #tpu.dot_dimension_numbers<[1], [0], [0], [1], [0, 0, 1, 1], [], []>} : vector<10x32xf32>, vector<32x32xf32>, vector<10x32xf32> -> vector<10x32xf32>
    %c0_66 = arith.constant 0 : index
    %c0_67 = arith.constant 0 : index
    %129 = vector.load %arg16[%c0_66, %c0_67] : memref<1x32xf32, #tpu.memory_space<vmem>>, vector<1x32xf32>
    %130 = vector.broadcast %129 : vector<1x32xf32> to vector<10x32xf32>
    %131 = arith.addf %128, %130 : vector<10x32xf32>
    %c0_68 = arith.constant 0 : index
    %c0_69 = arith.constant 0 : index
    %132 = vector.load %arg17[%c0_68, %c0_69] : memref<32x32xf32, #tpu.memory_space<vmem>>, vector<32x32xf32>
    %cst_70 = arith.constant dense<0.000000e+00> : vector<10x32xf32>
    %133 = tpu.matmul %3, %132, %cst_70 {dimension_numbers = #tpu.dot_dimension_numbers<[1], [0], [0], [1], [0, 0, 1, 1], [], []>} : vector<10x32xf32>, vector<32x32xf32>, vector<10x32xf32> -> vector<10x32xf32>
    %c0_71 = arith.constant 0 : index
    %c0_72 = arith.constant 0 : index
    %134 = vector.load %arg18[%c0_71, %c0_72] : memref<1x32xf32, #tpu.memory_space<vmem>>, vector<1x32xf32>
    %135 = vector.broadcast %134 : vector<1x32xf32> to vector<10x32xf32>
    %136 = arith.addf %133, %135 : vector<10x32xf32>
    %137 = vector.extract_strided_slice %126 {offsets = [0, 0], sizes = [8, 8], strides = [1, 1]} : vector<8x32xf32> to vector<8x8xf32>
    %138 = vector.extract_strided_slice %131 {offsets = [0, 0], sizes = [10, 8], strides = [1, 1]} : vector<10x32xf32> to vector<10x8xf32>
    %cst_73 = arith.constant dense<0.000000e+00> : vector<8x10xf32>
    %139 = tpu.matmul %137, %138, %cst_73 {dimension_numbers = #tpu.dot_dimension_numbers<[1], [1], [0], [0], [0, 0, 1, 0], [], []>} : vector<8x8xf32>, vector<10x8xf32>, vector<8x10xf32> -> vector<8x10xf32>
    %cst_74 = arith.constant dense<0xFF800000> : vector<8xf32>
    %140 = vector.multi_reduction <maximumf>, %139, %cst_74 [1] : vector<8x10xf32> to vector<8xf32>
    %141 = vector.shape_cast %140 : vector<8xf32> to vector<8x1xf32>
    %142 = vector.broadcast %141 : vector<8x1xf32> to vector<8x10xf32>
    %143 = arith.subf %139, %142 : vector<8x10xf32>
    %144 = math.exp %143 : vector<8x10xf32>
    %cst_75 = arith.constant dense<0.000000e+00> : vector<8xf32>
    %145 = vector.multi_reduction <add>, %144, %cst_75 [1] : vector<8x10xf32> to vector<8xf32>
    %146 = vector.shape_cast %145 : vector<8xf32> to vector<8x1xf32>
    %147 = vector.broadcast %146 : vector<8x1xf32> to vector<8x10xf32>
    %148 = arith.divf %144, %147 : vector<8x10xf32>
    %149 = vector.extract_strided_slice %136 {offsets = [0, 0], sizes = [10, 8], strides = [1, 1]} : vector<10x32xf32> to vector<10x8xf32>
    %cst_76 = arith.constant dense<0.000000e+00> : vector<8x8xf32>
    %150 = tpu.matmul %148, %149, %cst_76 {dimension_numbers = #tpu.dot_dimension_numbers<[1], [0], [0], [1], [0, 0, 1, 1], [], []>} : vector<8x10xf32>, vector<10x8xf32>, vector<8x8xf32> -> vector<8x8xf32>
    %c0_77 = arith.constant 0 : index
    %c0_78 = arith.constant 0 : index
    %151 = vector.load %arg19[%c0_77, %c0_78] : memref<32x32xf32, #tpu.memory_space<vmem>>, vector<8x32xf32>
    %cst_79 = arith.constant dense<0.000000e+00> : vector<8x32xf32>
    %152 = tpu.matmul %150, %151, %cst_79 {dimension_numbers = #tpu.dot_dimension_numbers<[1], [0], [0], [1], [0, 0, 1, 1], [], []>} : vector<8x8xf32>, vector<8x32xf32>, vector<8x32xf32> -> vector<8x32xf32>
    %153 = vector.extract_strided_slice %126 {offsets = [0, 8], sizes = [8, 8], strides = [1, 1]} : vector<8x32xf32> to vector<8x8xf32>
    %154 = vector.extract_strided_slice %131 {offsets = [0, 8], sizes = [10, 8], strides = [1, 1]} : vector<10x32xf32> to vector<10x8xf32>
    %cst_80 = arith.constant dense<0.000000e+00> : vector<8x10xf32>
    %155 = tpu.matmul %153, %154, %cst_80 {dimension_numbers = #tpu.dot_dimension_numbers<[1], [1], [0], [0], [0, 0, 1, 0], [], []>} : vector<8x8xf32>, vector<10x8xf32>, vector<8x10xf32> -> vector<8x10xf32>
    %cst_81 = arith.constant dense<0xFF800000> : vector<8xf32>
    %156 = vector.multi_reduction <maximumf>, %155, %cst_81 [1] : vector<8x10xf32> to vector<8xf32>
    %157 = vector.shape_cast %156 : vector<8xf32> to vector<8x1xf32>
    %158 = vector.broadcast %157 : vector<8x1xf32> to vector<8x10xf32>
    %159 = arith.subf %155, %158 : vector<8x10xf32>
    %160 = math.exp %159 : vector<8x10xf32>
    %cst_82 = arith.constant dense<0.000000e+00> : vector<8xf32>
    %161 = vector.multi_reduction <add>, %160, %cst_82 [1] : vector<8x10xf32> to vector<8xf32>
    %162 = vector.shape_cast %161 : vector<8xf32> to vector<8x1xf32>
    %163 = vector.broadcast %162 : vector<8x1xf32> to vector<8x10xf32>
    %164 = arith.divf %160, %163 : vector<8x10xf32>
    %165 = vector.extract_strided_slice %136 {offsets = [0, 8], sizes = [10, 8], strides = [1, 1]} : vector<10x32xf32> to vector<10x8xf32>
    %cst_83 = arith.constant dense<0.000000e+00> : vector<8x8xf32>
    %166 = tpu.matmul %164, %165, %cst_83 {dimension_numbers = #tpu.dot_dimension_numbers<[1], [0], [0], [1], [0, 0, 1, 1], [], []>} : vector<8x10xf32>, vector<10x8xf32>, vector<8x8xf32> -> vector<8x8xf32>
    %c8_84 = arith.constant 8 : index
    %c0_85 = arith.constant 0 : index
    %167 = vector.load %arg19[%c8_84, %c0_85] : memref<32x32xf32, #tpu.memory_space<vmem>>, vector<8x32xf32>
    %cst_86 = arith.constant dense<0.000000e+00> : vector<8x32xf32>
    %168 = tpu.matmul %166, %167, %cst_86 {dimension_numbers = #tpu.dot_dimension_numbers<[1], [0], [0], [1], [0, 0, 1, 1], [], []>} : vector<8x8xf32>, vector<8x32xf32>, vector<8x32xf32> -> vector<8x32xf32>
    %169 = arith.addf %152, %168 : vector<8x32xf32>
    %170 = arith.addf %148, %164 : vector<8x10xf32>
    %171 = vector.extract_strided_slice %126 {offsets = [0, 16], sizes = [8, 8], strides = [1, 1]} : vector<8x32xf32> to vector<8x8xf32>
    %172 = vector.extract_strided_slice %131 {offsets = [0, 16], sizes = [10, 8], strides = [1, 1]} : vector<10x32xf32> to vector<10x8xf32>
    %cst_87 = arith.constant dense<0.000000e+00> : vector<8x10xf32>
    %173 = tpu.matmul %171, %172, %cst_87 {dimension_numbers = #tpu.dot_dimension_numbers<[1], [1], [0], [0], [0, 0, 1, 0], [], []>} : vector<8x8xf32>, vector<10x8xf32>, vector<8x10xf32> -> vector<8x10xf32>
    %cst_88 = arith.constant dense<0xFF800000> : vector<8xf32>
    %174 = vector.multi_reduction <maximumf>, %173, %cst_88 [1] : vector<8x10xf32> to vector<8xf32>
    %175 = vector.shape_cast %174 : vector<8xf32> to vector<8x1xf32>
    %176 = vector.broadcast %175 : vector<8x1xf32> to vector<8x10xf32>
    %177 = arith.subf %173, %176 : vector<8x10xf32>
    %178 = math.exp %177 : vector<8x10xf32>
    %cst_89 = arith.constant dense<0.000000e+00> : vector<8xf32>
    %179 = vector.multi_reduction <add>, %178, %cst_89 [1] : vector<8x10xf32> to vector<8xf32>
    %180 = vector.shape_cast %179 : vector<8xf32> to vector<8x1xf32>
    %181 = vector.broadcast %180 : vector<8x1xf32> to vector<8x10xf32>
    %182 = arith.divf %178, %181 : vector<8x10xf32>
    %183 = vector.extract_strided_slice %136 {offsets = [0, 16], sizes = [10, 8], strides = [1, 1]} : vector<10x32xf32> to vector<10x8xf32>
    %cst_90 = arith.constant dense<0.000000e+00> : vector<8x8xf32>
    %184 = tpu.matmul %182, %183, %cst_90 {dimension_numbers = #tpu.dot_dimension_numbers<[1], [0], [0], [1], [0, 0, 1, 1], [], []>} : vector<8x10xf32>, vector<10x8xf32>, vector<8x8xf32> -> vector<8x8xf32>
    %c16_91 = arith.constant 16 : index
    %c0_92 = arith.constant 0 : index
    %185 = vector.load %arg19[%c16_91, %c0_92] : memref<32x32xf32, #tpu.memory_space<vmem>>, vector<8x32xf32>
    %cst_93 = arith.constant dense<0.000000e+00> : vector<8x32xf32>
    %186 = tpu.matmul %184, %185, %cst_93 {dimension_numbers = #tpu.dot_dimension_numbers<[1], [0], [0], [1], [0, 0, 1, 1], [], []>} : vector<8x8xf32>, vector<8x32xf32>, vector<8x32xf32> -> vector<8x32xf32>
    %187 = arith.addf %169, %186 : vector<8x32xf32>
    %188 = arith.addf %170, %182 : vector<8x10xf32>
    %189 = vector.extract_strided_slice %126 {offsets = [0, 24], sizes = [8, 8], strides = [1, 1]} : vector<8x32xf32> to vector<8x8xf32>
    %190 = vector.extract_strided_slice %131 {offsets = [0, 24], sizes = [10, 8], strides = [1, 1]} : vector<10x32xf32> to vector<10x8xf32>
    %cst_94 = arith.constant dense<0.000000e+00> : vector<8x10xf32>
    %191 = tpu.matmul %189, %190, %cst_94 {dimension_numbers = #tpu.dot_dimension_numbers<[1], [1], [0], [0], [0, 0, 1, 0], [], []>} : vector<8x8xf32>, vector<10x8xf32>, vector<8x10xf32> -> vector<8x10xf32>
    %cst_95 = arith.constant dense<0xFF800000> : vector<8xf32>
    %192 = vector.multi_reduction <maximumf>, %191, %cst_95 [1] : vector<8x10xf32> to vector<8xf32>
    %193 = vector.shape_cast %192 : vector<8xf32> to vector<8x1xf32>
    %194 = vector.broadcast %193 : vector<8x1xf32> to vector<8x10xf32>
    %195 = arith.subf %191, %194 : vector<8x10xf32>
    %196 = math.exp %195 : vector<8x10xf32>
    %cst_96 = arith.constant dense<0.000000e+00> : vector<8xf32>
    %197 = vector.multi_reduction <add>, %196, %cst_96 [1] : vector<8x10xf32> to vector<8xf32>
    %198 = vector.shape_cast %197 : vector<8xf32> to vector<8x1xf32>
    %199 = vector.broadcast %198 : vector<8x1xf32> to vector<8x10xf32>
    %200 = arith.divf %196, %199 : vector<8x10xf32>
    %201 = vector.extract_strided_slice %136 {offsets = [0, 24], sizes = [10, 8], strides = [1, 1]} : vector<10x32xf32> to vector<10x8xf32>
    %cst_97 = arith.constant dense<0.000000e+00> : vector<8x8xf32>
    %202 = tpu.matmul %200, %201, %cst_97 {dimension_numbers = #tpu.dot_dimension_numbers<[1], [0], [0], [1], [0, 0, 1, 1], [], []>} : vector<8x10xf32>, vector<10x8xf32>, vector<8x8xf32> -> vector<8x8xf32>
    %c24_98 = arith.constant 24 : index
    %c0_99 = arith.constant 0 : index
    %203 = vector.load %arg19[%c24_98, %c0_99] : memref<32x32xf32, #tpu.memory_space<vmem>>, vector<8x32xf32>
    %cst_100 = arith.constant dense<0.000000e+00> : vector<8x32xf32>
    %204 = tpu.matmul %202, %203, %cst_100 {dimension_numbers = #tpu.dot_dimension_numbers<[1], [0], [0], [1], [0, 0, 1, 1], [], []>} : vector<8x8xf32>, vector<8x32xf32>, vector<8x32xf32> -> vector<8x32xf32>
    %205 = arith.addf %187, %204 : vector<8x32xf32>
    %206 = arith.addf %188, %200 : vector<8x10xf32>
    %cst_101 = arith.constant 2.500000e-01 : f32
    %207 = vector.broadcast %cst_101 : f32 to vector<8x10xf32>
    %208 = arith.mulf %206, %207 : vector<8x10xf32>
    %209 = arith.addf %117, %205 : vector<8x32xf32>
    %c0_102 = arith.constant 0 : index
    %c0_103 = arith.constant 0 : index
    %210 = vector.load %arg20[%c0_102, %c0_103] : memref<1x32xf32, #tpu.memory_space<vmem>>, vector<1x32xf32>
    %211 = vector.broadcast %210 : vector<1x32xf32> to vector<8x32xf32>
    %212 = arith.addf %209, %211 : vector<8x32xf32>
    %c0_104 = arith.constant 0 : index
    %c0_105 = arith.constant 0 : index
    %213 = vector.load %arg21[%c0_104, %c0_105] : memref<1x32xf32, #tpu.memory_space<vmem>>, vector<1x32xf32>
    %c0_106 = arith.constant 0 : index
    %c0_107 = arith.constant 0 : index
    %214 = vector.load %arg22[%c0_106, %c0_107] : memref<1x32xf32, #tpu.memory_space<vmem>>, vector<1x32xf32>
    %cst_108 = arith.constant dense<0.000000e+00> : vector<8xf32>
    %215 = vector.multi_reduction <add>, %212, %cst_108 [1] : vector<8x32xf32> to vector<8xf32>
    %216 = vector.shape_cast %215 : vector<8xf32> to vector<8x1xf32>
    %cst_109 = arith.constant 3.200000e+01 : f32
    %217 = vector.broadcast %cst_109 : f32 to vector<8x1xf32>
    %218 = arith.divf %216, %217 : vector<8x1xf32>
    %219 = vector.broadcast %218 : vector<8x1xf32> to vector<8x32xf32>
    %220 = arith.subf %212, %219 : vector<8x32xf32>
    %221 = arith.mulf %220, %220 : vector<8x32xf32>
    %cst_110 = arith.constant dense<0.000000e+00> : vector<8xf32>
    %222 = vector.multi_reduction <add>, %221, %cst_110 [1] : vector<8x32xf32> to vector<8xf32>
    %223 = vector.shape_cast %222 : vector<8xf32> to vector<8x1xf32>
    %cst_111 = arith.constant 3.200000e+01 : f32
    %224 = vector.broadcast %cst_111 : f32 to vector<8x1xf32>
    %225 = arith.divf %223, %224 : vector<8x1xf32>
    %226 = vector.broadcast %218 : vector<8x1xf32> to vector<8x32xf32>
    %227 = arith.subf %212, %226 : vector<8x32xf32>
    %cst_112 = arith.constant 9.99999974E-6 : f32
    %228 = vector.broadcast %cst_112 : f32 to vector<8x1xf32>
    %229 = arith.addf %225, %228 : vector<8x1xf32>
    %230 = math.rsqrt %229 : vector<8x1xf32>
    %231 = vector.broadcast %230 : vector<8x1xf32> to vector<8x32xf32>
    %232 = arith.mulf %227, %231 : vector<8x32xf32>
    %233 = vector.broadcast %213 : vector<1x32xf32> to vector<8x32xf32>
    %234 = arith.mulf %232, %233 : vector<8x32xf32>
    %235 = vector.broadcast %214 : vector<1x32xf32> to vector<8x32xf32>
    %236 = arith.addf %234, %235 : vector<8x32xf32>
    %c0_113 = arith.constant 0 : index
    %c0_114 = arith.constant 0 : index
    %237 = vector.load %arg23[%c0_113, %c0_114] : memref<32x64xf32, #tpu.memory_space<vmem>>, vector<32x64xf32>
    %cst_115 = arith.constant dense<0.000000e+00> : vector<8x64xf32>
    %238 = tpu.matmul %236, %237, %cst_115 {dimension_numbers = #tpu.dot_dimension_numbers<[1], [0], [0], [1], [0, 0, 1, 1], [], []>} : vector<8x32xf32>, vector<32x64xf32>, vector<8x64xf32> -> vector<8x64xf32>
    %c0_116 = arith.constant 0 : index
    %c0_117 = arith.constant 0 : index
    %239 = vector.load %arg24[%c0_116, %c0_117] : memref<1x64xf32, #tpu.memory_space<vmem>>, vector<1x64xf32>
    %240 = vector.broadcast %239 : vector<1x64xf32> to vector<8x64xf32>
    %241 = arith.addf %238, %240 : vector<8x64xf32>
    %cst_118 = arith.constant 0.000000e+00 : f32
    %242 = vector.broadcast %cst_118 : f32 to vector<8x64xf32>
    %243 = arith.maximumf %241, %242 : vector<8x64xf32>
    %c0_119 = arith.constant 0 : index
    %c0_120 = arith.constant 0 : index
    %244 = vector.load %arg25[%c0_119, %c0_120] : memref<64x32xf32, #tpu.memory_space<vmem>>, vector<64x32xf32>
    %cst_121 = arith.constant dense<0.000000e+00> : vector<8x32xf32>
    %245 = tpu.matmul %243, %244, %cst_121 {dimension_numbers = #tpu.dot_dimension_numbers<[1], [0], [0], [1], [0, 0, 1, 1], [], []>} : vector<8x64xf32>, vector<64x32xf32>, vector<8x32xf32> -> vector<8x32xf32>
    %c0_122 = arith.constant 0 : index
    %c0_123 = arith.constant 0 : index
    %246 = vector.load %arg26[%c0_122, %c0_123] : memref<1x32xf32, #tpu.memory_space<vmem>>, vector<1x32xf32>
    %247 = vector.broadcast %246 : vector<1x32xf32> to vector<8x32xf32>
    %248 = arith.addf %245, %247 : vector<8x32xf32>
    %249 = arith.addf %236, %248 : vector<8x32xf32>
    %c0_124 = arith.constant 0 : index
    %c0_125 = arith.constant 0 : index
    %250 = vector.load %arg27[%c0_124, %c0_125] : memref<1x32xf32, #tpu.memory_space<vmem>>, vector<1x32xf32>
    %c0_126 = arith.constant 0 : index
    %c0_127 = arith.constant 0 : index
    %251 = vector.load %arg28[%c0_126, %c0_127] : memref<1x32xf32, #tpu.memory_space<vmem>>, vector<1x32xf32>
    %cst_128 = arith.constant dense<0.000000e+00> : vector<8xf32>
    %252 = vector.multi_reduction <add>, %249, %cst_128 [1] : vector<8x32xf32> to vector<8xf32>
    %253 = vector.shape_cast %252 : vector<8xf32> to vector<8x1xf32>
    %cst_129 = arith.constant 3.200000e+01 : f32
    %254 = vector.broadcast %cst_129 : f32 to vector<8x1xf32>
    %255 = arith.divf %253, %254 : vector<8x1xf32>
    %256 = vector.broadcast %255 : vector<8x1xf32> to vector<8x32xf32>
    %257 = arith.subf %249, %256 : vector<8x32xf32>
    %258 = arith.mulf %257, %257 : vector<8x32xf32>
    %cst_130 = arith.constant dense<0.000000e+00> : vector<8xf32>
    %259 = vector.multi_reduction <add>, %258, %cst_130 [1] : vector<8x32xf32> to vector<8xf32>
    %260 = vector.shape_cast %259 : vector<8xf32> to vector<8x1xf32>
    %cst_131 = arith.constant 3.200000e+01 : f32
    %261 = vector.broadcast %cst_131 : f32 to vector<8x1xf32>
    %262 = arith.divf %260, %261 : vector<8x1xf32>
    %263 = vector.broadcast %255 : vector<8x1xf32> to vector<8x32xf32>
    %264 = arith.subf %249, %263 : vector<8x32xf32>
    %cst_132 = arith.constant 9.99999974E-6 : f32
    %265 = vector.broadcast %cst_132 : f32 to vector<8x1xf32>
    %266 = arith.addf %262, %265 : vector<8x1xf32>
    %267 = math.rsqrt %266 : vector<8x1xf32>
    %268 = vector.broadcast %267 : vector<8x1xf32> to vector<8x32xf32>
    %269 = arith.mulf %264, %268 : vector<8x32xf32>
    %270 = vector.broadcast %250 : vector<1x32xf32> to vector<8x32xf32>
    %271 = arith.mulf %269, %270 : vector<8x32xf32>
    %272 = vector.broadcast %251 : vector<1x32xf32> to vector<8x32xf32>
    %273 = arith.addf %271, %272 : vector<8x32xf32>
    %c0_133 = arith.constant 0 : index
    %c0_134 = arith.constant 0 : index
    %c0_135 = arith.constant 0 : index
    %274 = vector.load %arg29[%c0_133, %c0_134, %c0_135] : memref<1x8x32xf32, #tpu.memory_space<vmem>>, vector<1x8x32xf32>
    %275 = vector.shape_cast %274 : vector<1x8x32xf32> to vector<8x32xf32>
    %276 = vector.shape_cast %273 : vector<8x32xf32> to vector<1x8x32xf32>
    tpu.vector_store %arg29[%c0_133, %c0_134, %c0_135], %276 {strides = array<i32>} : memref<1x8x32xf32, #tpu.memory_space<vmem>>, vector<1x8x32xf32>,
    %c0_136 = arith.constant 0 : index
    %c0_137 = arith.constant 0 : index
    %c0_138 = arith.constant 0 : index
    %277 = vector.load %arg30[%c0_136, %c0_137, %c0_138] : memref<1x8x10xf32, #tpu.memory_space<vmem>>, vector<1x8x10xf32>
    %278 = vector.shape_cast %277 : vector<1x8x10xf32> to vector<8x10xf32>
    %279 = vector.shape_cast %208 : vector<8x10xf32> to vector<1x8x10xf32>
    tpu.vector_store %arg30[%c0_136, %c0_137, %c0_138], %279 {strides = array<i32>} : memref<1x8x10xf32, #tpu.memory_space<vmem>>, vector<1x8x10xf32>,
    return
  }
  func.func @transform_0(%arg0: i32) -> (i32, i32, i32) {
    %c0_i32 = arith.constant 0 : i32
    %c0_i32_0 = arith.constant 0 : i32
    %c0_i32_1 = arith.constant 0 : i32
    return %arg0, %c0_i32, %c0_i32_0 : i32, i32, i32
  }
  func.func @transform_1(%arg0: i32) -> (i32, i32, i32) {
    %c0_i32 = arith.constant 0 : i32
    %c0_i32_0 = arith.constant 0 : i32
    %c0_i32_1 = arith.constant 0 : i32
    return %arg0, %c0_i32, %c0_i32_0 : i32, i32, i32
  }
  func.func @transform_2(%arg0: i32) -> (i32, i32, i32) {
    %c0_i32 = arith.constant 0 : i32
    %c0_i32_0 = arith.constant 0 : i32
    %c0_i32_1 = arith.constant 0 : i32
    return %arg0, %c0_i32, %c0_i32_0 : i32, i32, i32
  }
  func.func @transform_3(%arg0: i32) -> (i32, i32, i32) {
    %c0_i32 = arith.constant 0 : i32
    %c0_i32_0 = arith.constant 0 : i32
    %c0_i32_1 = arith.constant 0 : i32
    return %arg0, %c0_i32, %c0_i32_0 : i32, i32, i32
  }
  func.func @transform_4(%arg0: i32) -> (i32, i32) {
    %c0_i32 = arith.constant 0 : i32
    %c0_i32_0 = arith.constant 0 : i32
    %c0_i32_1 = arith.constant 0 : i32
    return %c0_i32, %c0_i32_0 : i32, i32
  }
  func.func @transform_5(%arg0: i32) -> (i32, i32) {
    %c0_i32 = arith.constant 0 : i32
    %c0_i32_0 = arith.constant 0 : i32
    %c0_i32_1 = arith.constant 0 : i32
    return %c0_i32, %c0_i32_0 : i32, i32
  }
  func.func @transform_6(%arg0: i32) -> (i32, i32) {
    %c0_i32 = arith.constant 0 : i32
    %c0_i32_0 = arith.constant 0 : i32
    %c0_i32_1 = arith.constant 0 : i32
    return %c0_i32, %c0_i32_0 : i32, i32
  }
  func.func @transform_7(%arg0: i32) -> (i32, i32) {
    %c0_i32 = arith.constant 0 : i32
    %c0_i32_0 = arith.constant 0 : i32
    %c0_i32_1 = arith.constant 0 : i32
    return %c0_i32, %c0_i32_0 : i32, i32
  }
  func.func @transform_8(%arg0: i32) -> (i32, i32) {
    %c0_i32 = arith.constant 0 : i32
    %c0_i32_0 = arith.constant 0 : i32
    %c0_i32_1 = arith.constant 0 : i32
    return %c0_i32, %c0_i32_0 : i32, i32
  }
  func.func @transform_9(%arg0: i32) -> (i32, i32) {
    %c0_i32 = arith.constant 0 : i32
    %c0_i32_0 = arith.constant 0 : i32
    %c0_i32_1 = arith.constant 0 : i32
    return %c0_i32, %c0_i32_0 : i32, i32
  }
  func.func @transform_10(%arg0: i32) -> (i32, i32) {
    %c0_i32 = arith.constant 0 : i32
    %c0_i32_0 = arith.constant 0 : i32
    %c0_i32_1 = arith.constant 0 : i32
    return %c0_i32, %c0_i32_0 : i32, i32
  }
  func.func @transform_11(%arg0: i32) -> (i32, i32) {
    %c0_i32 = arith.constant 0 : i32
    %c0_i32_0 = arith.constant 0 : i32
    %c0_i32_1 = arith.constant 0 : i32
    return %c0_i32, %c0_i32_0 : i32, i32
  }
  func.func @transform_12(%arg0: i32) -> (i32, i32) {
    %c0_i32 = arith.constant 0 : i32
    %c0_i32_0 = arith.constant 0 : i32
    %c0_i32_1 = arith.constant 0 : i32
    return %c0_i32, %c0_i32_0 : i32, i32
  }
  func.func @transform_13(%arg0: i32) -> (i32, i32) {
    %c0_i32 = arith.constant 0 : i32
    %c0_i32_0 = arith.constant 0 : i32
    %c0_i32_1 = arith.constant 0 : i32
    return %c0_i32, %c0_i32_0 : i32, i32
  }
  func.func @transform_14(%arg0: i32) -> (i32, i32) {
    %c0_i32 = arith.constant 0 : i32
    %c0_i32_0 = arith.constant 0 : i32
    %c0_i32_1 = arith.constant 0 : i32
    return %c0_i32, %c0_i32_0 : i32, i32
  }
  func.func @transform_15(%arg0: i32) -> (i32, i32) {
    %c0_i32 = arith.constant 0 : i32
    %c0_i32_0 = arith.constant 0 : i32
    %c0_i32_1 = arith.constant 0 : i32
    return %c0_i32, %c0_i32_0 : i32, i32
  }
  func.func @transform_16(%arg0: i32) -> (i32, i32) {
    %c0_i32 = arith.constant 0 : i32
    %c0_i32_0 = arith.constant 0 : i32
    %c0_i32_1 = arith.constant 0 : i32
    return %c0_i32, %c0_i32_0 : i32, i32
  }
  func.func @transform_17(%arg0: i32) -> (i32, i32) {
    %c0_i32 = arith.constant 0 : i32
    %c0_i32_0 = arith.constant 0 : i32
    %c0_i32_1 = arith.constant 0 : i32
    return %c0_i32, %c0_i32_0 : i32, i32
  }
  func.func @transform_18(%arg0: i32) -> (i32, i32) {
    %c0_i32 = arith.constant 0 : i32
    %c0_i32_0 = arith.constant 0 : i32
    %c0_i32_1 = arith.constant 0 : i32
    return %c0_i32, %c0_i32_0 : i32, i32
  }
  func.func @transform_19(%arg0: i32) -> (i32, i32) {
    %c0_i32 = arith.constant 0 : i32
    %c0_i32_0 = arith.constant 0 : i32
    %c0_i32_1 = arith.constant 0 : i32
    return %c0_i32, %c0_i32_0 : i32, i32
  }
  func.func @transform_20(%arg0: i32) -> (i32, i32) {
    %c0_i32 = arith.constant 0 : i32
    %c0_i32_0 = arith.constant 0 : i32
    %c0_i32_1 = arith.constant 0 : i32
    return %c0_i32, %c0_i32_0 : i32, i32
  }
  func.func @transform_21(%arg0: i32) -> (i32, i32) {
    %c0_i32 = arith.constant 0 : i32
    %c0_i32_0 = arith.constant 0 : i32
    %c0_i32_1 = arith.constant 0 : i32
    return %c0_i32, %c0_i32_0 : i32, i32
  }
  func.func @transform_22(%arg0: i32) -> (i32, i32) {
    %c0_i32 = arith.constant 0 : i32
    %c0_i32_0 = arith.constant 0 : i32
    %c0_i32_1 = arith.constant 0 : i32
    return %c0_i32, %c0_i32_0 : i32, i32
  }
  func.func @transform_23(%arg0: i32) -> (i32, i32) {
    %c0_i32 = arith.constant 0 : i32
    %c0_i32_0 = arith.constant 0 : i32
    %c0_i32_1 = arith.constant 0 : i32
    return %c0_i32, %c0_i32_0 : i32, i32
  }
  func.func @transform_24(%arg0: i32) -> (i32, i32) {
    %c0_i32 = arith.constant 0 : i32
    %c0_i32_0 = arith.constant 0 : i32
    %c0_i32_1 = arith.constant 0 : i32
    return %c0_i32, %c0_i32_0 : i32, i32
  }
  func.func @transform_25(%arg0: i32) -> (i32, i32) {
    %c0_i32 = arith.constant 0 : i32
    %c0_i32_0 = arith.constant 0 : i32
    %c0_i32_1 = arith.constant 0 : i32
    return %c0_i32, %c0_i32_0 : i32, i32
  }
  func.func @transform_26(%arg0: i32) -> (i32, i32) {
    %c0_i32 = arith.constant 0 : i32
    %c0_i32_0 = arith.constant 0 : i32
    %c0_i32_1 = arith.constant 0 : i32
    return %c0_i32, %c0_i32_0 : i32, i32
  }
  func.func @transform_27(%arg0: i32) -> (i32, i32) {
    %c0_i32 = arith.constant 0 : i32
    %c0_i32_0 = arith.constant 0 : i32
    %c0_i32_1 = arith.constant 0 : i32
    return %c0_i32, %c0_i32_0 : i32, i32
  }
  func.func @transform_28(%arg0: i32) -> (i32, i32, i32) {
    %c0_i32 = arith.constant 0 : i32
    %c0_i32_0 = arith.constant 0 : i32
    %c0_i32_1 = arith.constant 0 : i32
    return %arg0, %c0_i32, %c0_i32_0 : i32, i32, i32
  }
  func.func @transform_29(%arg0: i32) -> (i32, i32, i32) {
    %c0_i32 = arith.constant 0 : i32
    %c0_i32_0 = arith.constant 0 : i32
    %c0_i32_1 = arith.constant 0 : i32
    return %arg0, %c0_i32, %c0_i32_0 : i32, i32, i32
  }
}

</mosaic_0001>

<bundles_post_ra>
// kernel: tpu_custom_call.1
= control target key start
LH: loop header
LB: loop body
LE: loop exit
PB: predicated region body
PF: predicated region fallthrough
CT: control target
= control target key end

     0   :  { %s5234_s6 = smov 1   ;;  %s5235_s10 = smov 2   ;;  %s6100_s0 = inlined_call_operand.smem [shape: u32[30], index: -1, kind: input, shape index: {}] }
   0x1   :  { %s5296_s5 = sld [smem:[%s6100_s0]]   ;;  %s5236_s14 = smov 3  }
   0x2   :  { %s5301_s9 = sld [smem:[%s6100_s0 + %s5234_s6]]   ;;  %s5237_s18 = smov 4  }
   0x3   :  { %s5306_s13 = sld [smem:[%s6100_s0 + %s5235_s10]]   ;;  %s5238_s22 = smov 5  }
   0x4   :  { %s5311_s17 = sld [smem:[%s6100_s0 + %s5236_s14]]   ;;  %s5239_s26 = smov 6  }
   0x5   :  { %s5316_s21 = sld [smem:[%s6100_s0 + %s5237_s18]]   ;;  %s5240_s30 = smov 7  }
   0x6   :  { %s5321_s25 = sld [smem:[%s6100_s0 + %s5238_s22]]   ;;  %s5241_s4 = smov 8  }
   0x7   :  { %6119 = sst [smem:[#allocation31_spill]] %s5296_s5  ;;  %s5242_s10 = smov 9  }
   0x8   :  { %6120 = sst [smem:[#allocation32_spill]] %s5301_s9  ;;  %s5243_s15 = smov 10  }
   0x9   :  { %s5326_s29 = sld [smem:[%s6100_s0 + %s5239_s26]]   ;;  %s5244_s20 = smov 11  }
   0xa   :  { %6121 = sst [smem:[#allocation33_spill]] %s5311_s17  ;;  %s5245_s26 = smov 12  }
   0xb   :  { %s5331_s3 = sld [smem:[%s6100_s0 + %s5240_s30]]   ;;  %s5246_s1 = smov 13  }
   0xc   :  { %6122 = sst [smem:[#allocation34_spill]] %s5321_s25  ;;  %s5247_s7 = smov 14  }
   0xd   :  { %s5336_s8 = sld [smem:[%s6100_s0 + %s5241_s4]]   ;;  %s5249_s22 = smov 16  }
   0xe   :  { %s5341_s14 = sld [smem:[%s6100_s0 + %s5242_s10]]   ;;  %s5250_s28 = smov 17  }
   0xf   :  { %s5346_s19 = sld [smem:[%s6100_s0 + %s5243_s15]]   ;;  %s5248_s15 = smov 15  }
  0x10   :  { %s5351_s24 = sld [smem:[%s6100_s0 + %s5244_s20]]  }
  0x11   :  { %6123 = sst [smem:[#allocation35_spill]] %s5331_s3 }
  0x12   :  { %s5356_s30 = sld [smem:[%s6100_s0 + %s5245_s26]]  }
  0x13   :  { %s5361_s6 = sld [smem:[%s6100_s0 + %s5246_s1]]  }
  0x14   :  { %6124 = sst [smem:[#allocation36_spill]] %s5341_s14 }
  0x15   :  { %6125 = sst [smem:[#allocation37_spill]] %s5346_s19 }
  0x16   :  { %6126 = sst [smem:[#allocation38_spill]] %s5351_s24 }
  0x17   :  { %s5366_s12 = sld [smem:[%s6100_s0 + %s5247_s7]]   ;;  %s5251_s7 = smov 18  }
  0x18   :  { %6127 = sst [smem:[#allocation39_spill]] %s5356_s30 }
  0x19   :  { %6128 = sst [smem:[#allocation40_spill]] %s5361_s6 }
  0x1a   :  { %s5371_s20 = sld [smem:[%s6100_s0 + %s5248_s15]]   ;;  %s5252_s15 = smov 19  }
  0x1b   :  { %s5376_s27 = sld [smem:[%s6100_s0 + %s5249_s22]]   ;;  %s5253_s22 = smov 20  }
  0x1c   :  { %s5381_s4 = sld [smem:[%s6100_s0 + %s5250_s28]]   ;;  %s5254_s28 = smov 21  }
  0x1d   :  { %s5386_s30 = sld [smem:[%s6100_s0 + %s5251_s7]]   ;;  %s5255_s7 = smov 22  }
  0x1e   :  { %s5391_s17 = sld [smem:[%s6100_s0 + %s5252_s15]]   ;;  %s5256_s15 = smov 23  }
  0x20   :  { %6129 = sst [smem:[#allocation41_spill]] %s5371_s20 }
  0x21   :  { %6130 = sst [smem:[#allocation42_spill]] %s5376_s27 }
  0x22   :  { %6131 = sst [smem:[#allocation43_spill]] %s5381_s4 }
  0x23   :  { %6132 = sst [smem:[#allocation44_spill]] %s5386_s30 }
  0x24   :  { %6133 = sst [smem:[#allocation45_spill]] %s5391_s17 }
  0x25   :  { %s5396_s27 = sld [smem:[%s6100_s0 + %s5253_s22]]   ;;  %s5257_s22 = smov 24  }
  0x26   :  { %s5401_s4 = sld [smem:[%s6100_s0 + %s5254_s28]]   ;;  %s5258_s28 = smov 25  }
  0x27   :  { %s5406_s30 = sld [smem:[%s6100_s0 + %s5255_s7]]   ;;  %s5259_s7 = smov 26  }
  0x28   :  { %s5411_s17 = sld [smem:[%s6100_s0 + %s5256_s15]]   ;;  %s5260_s15 = smov 27  }
  0x29   :  { %s5426_s9 = sld [smem:[%s6100_s0 + %s5259_s7]]  }
  0x2b   :  { %6134 = sst [smem:[#allocation46_spill]] %s5396_s27 }
  0x2c   :  { %6135 = sst [smem:[#allocation47_spill]] %s5401_s4 }
  0x2d   :  { %6136 = sst [smem:[#allocation48_spill]] %s5406_s30 }
  0x2e   :  { %6137 = sst [smem:[#allocation49_spill]] %s5411_s17 }
  0x2f   :  { %s5416_s27 = sld [smem:[%s6100_s0 + %s5257_s22]]   ;;  %s5261_s22 = smov 28  }
  0x30   :  { %s5421_s4 = sld [smem:[%s6100_s0 + %s5258_s28]]   ;;  %s5262_s28 = smov 29  }
  0x31   :  { %s5431_s17 = sld [smem:[%s6100_s0 + %s5260_s15]]  }
  0x35   :  { %6138 = sst [smem:[#allocation50_spill]] %s5416_s27 }
  0x36   :  { %6139 = sst [smem:[#allocation51_spill]] %s5421_s4 }
  0x37   :  { %6140 = sst [smem:[#allocation52_spill]] %s5431_s17 }
  0x38   :  { %s5436_s27 = sld [smem:[%s6100_s0 + %s5261_s22]]  }
  0x39   :  { %s5441_s4 = sld [smem:[%s6100_s0 + %s5262_s28]]  }
  0x3e   :  { %6141 = sst [smem:[#allocation53_spill]] %s5436_s27 }
  0x3f   :  { %65 = vsyncpa [#allocation3], 0 }
  0x40   :  { %67 = vsyncpa [#allocation3 + $0x1], 0 }
  0x41   :  { %68 = vsyncpa [#allocation6], 0 }
  0x42   :  { %70 = vsyncpa [#allocation6 + $0x1], 0 }
  0x43   :  { %71 = vsyncpa [#allocation9], 0 }
  0x44   :  { %72 = vsyncpa [#allocation12], 0 }
  0x45   :  { %73 = vsyncpa [#allocation15], 0 }
  0x46   :  { %74 = vsyncpa [#allocation18], 0 }
  0x47   :  { %75 = vsyncpa [#allocation4], 0 }
  0x48   :  { %77 = vsyncpa [#allocation4 + $0x1], 0 }
  0x49   :  { %78 = vsyncpa [#allocation21], 0 }
  0x4a   :  { %80 = vsyncpa [#allocation21 + $0x1], 0  ;;  %s5443_s7 = smov 0   ;;  %s5445_s10 = smov 0  }
  0x4b   :  { %s5447_s11 = smov 0   ;;  %s5449_s0 = smov 0  }
  0x4c LB: > { %s6142_s5 = sld [smem:[#allocation31_spill]]  ;;  %s6143_s30 = sld [smem:[#allocation48_spill]]  ;;  %s5220_s7 = sphi %s5443_s7, %s6194_s7   ;;  %s5232_s0 = sphi %s5449_s0, %s6197_s0   ;;  %s5228_s11 = sphi %s5447_s11, %s6196_s11   ;;  %s5224_s10 = sphi %s5445_s10, %s6195_s10  }
  0x4d   : > { %s6144_s25 = sld [smem:[#allocation34_spill]]  ;;  %s6145_s24 = sld [smem:[#allocation38_spill]] }
  0x4e   : > { %s6146_s20 = sld [smem:[#allocation41_spill]]  ;;  %s6147_s19 = sld [smem:[#allocation37_spill]] }
  0x4f   : > { %s6148_s14 = sld [smem:[#allocation36_spill]]  ;;  %s6149_s6 = sld [smem:[#allocation40_spill]] }
  0x50   : > { %s6150_s3 = sld [smem:[#allocation35_spill]]  ;;  %s5263_s15 = smov [#allocation7]  }
  0x51   : > { %s767_s16 = sshll.u32 %s5263_s15, 4  ;;  %s5464_s18 = sadd.s32 4294967295, %s5232_s0   ;;  %s5469_s16 = int_to_ptr.vmem [resolvable:$true] %s767_s16 }
  0x52   : > { %p4074_p0 = scmp.ge.s32.totalorder %s5232_s0, 1  ;;  %p6106_p1 = scmp.eq.s32.totalorder %s5464_s18, 0 }
  0x53   : > { %p751_p2 = scmp.lt.s32.totalorder %s5232_s0, 3  ;;  %s5264_s23 = smov [#allocation8]  }
  0x54   : > { %s781_s26 = sshll.u32 %s5264_s23, 4  ;;  %s5265_s28 = smov [#allocation11]   ;;  %s5478_s26 = int_to_ptr.vmem [resolvable:$true] %s781_s26 }
  0x55   : > { %p5471_p3 = pnand %p4074_p0, %p751_p2  ;;  %s806_s1 = sshll.u32 %s5265_s28, 4  ;;  %s5486_s1 = int_to_ptr.vmem [resolvable:$true] %s806_s1 }
  0x56   : > { %s5266_s15 = smov [#allocation14]   ;;  %s4826_s17 = scalar_lea.hbm %s6144_s25, 16 }
  0x57   : > { %s6151_s22 = scalar_select %p5471_p3, 1, 0 }
  0x58   : > { %p4619_p5 = pneg %p5471_p3  ;;  %s5488_s27 = sshll.u32 %s5266_s15, 4  ;;  %s832_s27 = int_to_ptr.vmem [resolvable:$true] %s5488_s27 }
  0x59   : > { %p4827_p7 = scmp.ne.s32.totalorder %s6144_s25, %s4826_s17  ;;  %p4833_p11 = scmp.lt.u32.totalorder %s4826_s17, %s6144_s25 }
  0x5a   : > { %p5482_p6 = pnand %p4619_p5, %p6106_p1 }
  0x5c   : > { %p5494_p8 = pneg %p5482_p6 }
  0x5e   : > { %p4829_p9 = pnand %p5494_p8, %p4827_p7 }
  0x60   : > { %p4830_p10 = pneg %p4829_p9 }
  0x62   : > { %p4835_p12 = pnand %p4833_p11, %p4830_p10 }
  0x64   : > { %4838 = shalt.err (!%p4835_p12)
}
  0x65   : > { %s4839_s28 = scalar_lea.vmem %s5469_s16, 16  ;;  %s4846_s15 = scalar_lea.vmem %s5469_s16, 32 }
  0x66   : > { %p4840_p13 = scmp.ne.s32.totalorder %s5469_s16, %s4839_s28  ;;  %p4847_p5 = scmp.lt.s32.totalorder %s5469_s16, %s5469_s16 }
  0x67   : > { %p4848_p4 = scmp.lt.s32.totalorder %s4846_s15, %s4839_s28 }
  0x68   : > { %p4842_p0 = pnand %p4840_p13, %p5494_p8 }
  0x69   : > { %p4849_p1 = por %p4848_p4, %p4847_p5 }
  0x6a   : > { %p4843_p2 = pneg %p4842_p0 }
  0x6c   : > { %p4850_p7 = pnand %p4849_p1, %p4843_p2 }
  0x6e   : > { %4853 = shalt.err (!%p4850_p7)
}
  0x6f   : > { %4622 = dma.hbm_to_vmem [thread:$0]  (!%p5482_p6), %s6144_s25, 16, %s5469_s16, [#allocation6]  }
  0x70   : > { %s4854_s17 = scalar_lea.hbm %s6150_s3, 16 }
  0x71   : > { %p4855_p9 = scmp.ne.s32.totalorder %s6150_s3, %s4854_s17  ;;  %p4861_p12 = scmp.lt.u32.totalorder %s4854_s17, %s6150_s3 }
  0x73   : > { %p4857_p10 = pnand %p4855_p9, %p5494_p8 }
  0x75   : > { %p4858_p11 = pneg %p4857_p10 }
  0x77   : > { %p4863_p13 = pnand %p4861_p12, %p4858_p11 }
  0x79   : > { %4866 = shalt.err (!%p4863_p13)
}
  0x7a   : > { %s4867_s28 = scalar_lea.vmem %s5478_s26, 16  ;;  %s4874_s15 = scalar_lea.vmem %s5478_s26, 32 }
  0x7b   : > { %p4868_p1 = scmp.ne.s32.totalorder %s5478_s26, %s4867_s28  ;;  %p4875_p2 = scmp.lt.s32.totalorder %s5478_s26, %s5478_s26 }
  0x7c   : > { %p4876_p5 = scmp.lt.s32.totalorder %s4874_s15, %s4867_s28 }
  0x7d   : > { %p4870_p4 = pnand %p4868_p1, %p5494_p8 }
  0x7e   : > { %p4877_p7 = por %p4876_p5, %p4875_p2 }
  0x7f   : > { %p4871_p0 = pneg %p4870_p4 }
  0x81   : > { %p4878_p9 = pnand %p4877_p7, %p4871_p0 }
  0x83   : > { %4881 = shalt.err (!%p4878_p9)
}
  0x84   : > { %4625 = dma.hbm_to_vmem [thread:$0]  (!%p5482_p6), %s6150_s3, 16, %s5478_s26, [#allocation9]  }
  0x85   : > { %s4882_s16 = scalar_lea.hbm %s6147_s19, 16 }
  0x86   : > { %p4883_p10 = scmp.ne.s32.totalorder %s6147_s19, %s4882_s16  ;;  %p4889_p13 = scmp.lt.u32.totalorder %s4882_s16, %s6147_s19 }
  0x88   : > { %p4885_p11 = pnand %p4883_p10, %p5494_p8 }
  0x8a   : > { %p4886_p12 = pneg %p4885_p11 }
  0x8c   : > { %p4891_p1 = pnand %p4889_p13, %p4886_p12 }
  0x8e   : > { %4894 = shalt.err (!%p4891_p1)
}
  0x8f   : > { %s4895_s17 = scalar_lea.vmem %s5486_s1, 16  ;;  %s4902_s28 = scalar_lea.vmem %s5486_s1, 32 }
  0x90   : > { %p4896_p4 = scmp.ne.s32.totalorder %s5486_s1, %s4895_s17  ;;  %p4903_p5 = scmp.lt.s32.totalorder %s5486_s1, %s5486_s1 }
  0x91   : > { %p4904_p7 = scmp.lt.s32.totalorder %s4902_s28, %s4895_s17 }
  0x92   : > { %p4898_p0 = pnand %p4896_p4, %p5494_p8 }
  0x93   : > { %p4905_p9 = por %p4904_p7, %p4903_p5 }
  0x94   : > { %p4899_p2 = pneg %p4898_p0 }
  0x96   : > { %p4906_p10 = pnand %p4905_p9, %p4899_p2 }
  0x98   : > { %4909 = shalt.err (!%p4906_p10)
}
  0x99   : > { %4631 = dma.hbm_to_vmem [thread:$0]  (!%p5482_p6), %s6147_s19, 16, %s5486_s1, [#allocation12]  }
  0x9a   : > { %s5267_s26 = smov [#allocation10]   ;;  %s4910_s16 = scalar_lea.hbm %s6149_s6, 16 }
  0x9b   : > { %s795_s15 = sshll.u32 %s5267_s26, 4  ;;  %p4911_p11 = scmp.ne.s32.totalorder %s6149_s6, %s4910_s16  ;;  %s796_s15 = int_to_ptr.vmem [resolvable:$true] %s795_s15 }
  0x9c   : > { %p4917_p1 = scmp.lt.u32.totalorder %s4910_s16, %s6149_s6 }
  0x9d   : > { %p4913_p12 = pnand %p4911_p11, %p5494_p8 }
  0x9f   : > { %p4914_p13 = pneg %p4913_p12 }
  0xa1   : > { %p4919_p4 = pnand %p4917_p1, %p4914_p13 }
  0xa3   : > { %4922 = shalt.err (!%p4919_p4)
}
  0xa4   : > { %s4923_s17 = scalar_lea.vmem %s832_s27, 16  ;;  %s4930_s28 = scalar_lea.vmem %s832_s27, 32 }
  0xa5   : > { %p4924_p0 = scmp.ne.s32.totalorder %s832_s27, %s4923_s17  ;;  %p4931_p7 = scmp.lt.s32.totalorder %s832_s27, %s832_s27 }
  0xa6   : > { %p4932_p9 = scmp.lt.s32.totalorder %s4930_s28, %s4923_s17 }
  0xa7   : > { %p4926_p2 = pnand %p4924_p0, %p5494_p8 }
  0xa8   : > { %p4933_p10 = por %p4932_p9, %p4931_p7 }
  0xa9   : > { %p4927_p5 = pneg %p4926_p2 }
  0xab   : > { %p4934_p3 = pnand %p4933_p10, %p4927_p5 }
  0xad   : > { %4937 = shalt.err (!%p4934_p3)
}
  0xae   : > { %4637 = dma.hbm_to_vmem [thread:$0]  (!%p5482_p6), %s6149_s6, 16, %s832_s27, [#allocation15]  }
  0xaf   : > { %s4938_s1 = scalar_lea.hbm %s6148_s14, 16 }
  0xb0   : > { %p4939_p11 = scmp.ne.s32.totalorder %s6148_s14, %s4938_s1  ;;  %p4945_p1 = scmp.lt.u32.totalorder %s4938_s1, %s6148_s14 }
  0xb2   : > { %p4941_p12 = pnand %p4939_p11, %p5494_p8 }
  0xb4   : > { %p4942_p13 = pneg %p4941_p12 }
  0xb6   : > { %p4947_p4 = pnand %p4945_p1, %p4942_p13 }
  0xb8   : > { %4950 = shalt.err (!%p4947_p4)
}
  0xb9   : > { %s4951_s26 = scalar_lea.vmem %s796_s15, 16  ;;  %s4958_s16 = scalar_lea.vmem %s796_s15, 32 }
  0xba   : > { %p4952_p3 = scmp.ne.s32.totalorder %s796_s15, %s4951_s26  ;;  %p4959_p5 = scmp.lt.s32.totalorder %s796_s15, %s796_s15 }
  0xbb   : > { %p4960_p7 = scmp.lt.s32.totalorder %s4958_s16, %s4951_s26 }
  0xbc   : > { %p4954_p0 = pnand %p4952_p3, %p5494_p8 }
  0xbd   : > { %p4961_p9 = por %p4960_p7, %p4959_p5 }
  0xbe   : > { %p4955_p2 = pneg %p4954_p0 }
  0xc0   : > { %p4962_p10 = pnand %p4961_p9, %p4955_p2 }
  0xc2   : > { %4965 = shalt.err (!%p4962_p10)
}
  0xc3   : > { %4628 = dma.hbm_to_vmem [thread:$0]  (!%p5482_p6), %s6148_s14, 16, %s796_s15, [#allocation9]  }
  0xc4   : > { %s5268_s27 = smov [#allocation13]   ;;  %s5269_s28 = smov [#allocation16]  }
  0xc5   : > { %s817_s17 = sshll.u32 %s5268_s27, 4  ;;  %s845_s1 = sshll.u32 %s5269_s28, 4  ;;  %s818_s17 = int_to_ptr.vmem [resolvable:$true] %s817_s17  ;;  %s846_s1 = int_to_ptr.vmem [resolvable:$true] %s845_s1 }
  0xc6   : > { %s4966_s3 = scalar_lea.hbm %s6145_s24, 16 }
  0xc7   : > { %p4967_p11 = scmp.ne.s32.totalorder %s6145_s24, %s4966_s3  ;;  %p4973_p1 = scmp.lt.u32.totalorder %s4966_s3, %s6145_s24 }
  0xc9   : > { %p4969_p12 = pnand %p4967_p11, %p5494_p8 }
  0xcb   : > { %p4970_p13 = pneg %p4969_p12 }
  0xcd   : > { %p4975_p4 = pnand %p4973_p1, %p4970_p13 }
  0xcf   : > { %4978 = shalt.err (!%p4975_p4)
}
  0xd0   : > { %s4979_s26 = scalar_lea.vmem %s818_s17, 16  ;;  %s4986_s15 = scalar_lea.vmem %s818_s17, 32 }
  0xd1   : > { %p4980_p3 = scmp.ne.s32.totalorder %s818_s17, %s4979_s26  ;;  %p4987_p5 = scmp.lt.s32.totalorder %s818_s17, %s818_s17 }
  0xd2   : > { %p4988_p7 = scmp.lt.s32.totalorder %s4986_s15, %s4979_s26 }
  0xd3   : > { %p4982_p0 = pnand %p4980_p3, %p5494_p8 }
  0xd4   : > { %p4989_p9 = por %p4988_p7, %p4987_p5 }
  0xd5   : > { %p4983_p2 = pneg %p4982_p0 }
  0xd7   : > { %p4990_p10 = pnand %p4989_p9, %p4983_p2 }
  0xd9   : > { %4993 = shalt.err (!%p4990_p10)
}
  0xda   : > { %4634 = dma.hbm_to_vmem [thread:$0]  (!%p5482_p6), %s6145_s24, 16, %s818_s17, [#allocation12]  }
  0xdb   : > { %s4994_s3 = scalar_lea.hbm %s6146_s20, 16 }
  0xdc   : > { %p4995_p11 = scmp.ne.s32.totalorder %s6146_s20, %s4994_s3  ;;  %p5001_p1 = scmp.lt.u32.totalorder %s4994_s3, %s6146_s20 }
  0xde   : > { %p4997_p12 = pnand %p4995_p11, %p5494_p8 }
  0xe0   : > { %p4998_p13 = pneg %p4997_p12 }
  0xe2   : > { %p5003_p4 = pnand %p5001_p1, %p4998_p13 }
  0xe4   : > { %5006 = shalt.err (!%p5003_p4)
}
  0xe5   : > { %s5007_s16 = scalar_lea.vmem %s846_s1, 16  ;;  %s5014_s27 = scalar_lea.vmem %s846_s1, 32 }
  0xe6   : > { %p5008_p3 = scmp.ne.s32.totalorder %s846_s1, %s5007_s16  ;;  %p5015_p5 = scmp.lt.s32.totalorder %s846_s1, %s846_s1 }
  0xe7   : > { %p5016_p7 = scmp.lt.s32.totalorder %s5014_s27, %s5007_s16 }
  0xe8   : > { %p5010_p0 = pnand %p5008_p3, %p5494_p8 }
  0xe9   : > { %p5017_p9 = por %p5016_p7, %p5015_p5 }
  0xea   : > { %p5011_p2 = pneg %p5010_p0 }
  0xec   : > { %p5018_p10 = pnand %p5017_p9, %p5011_p2 }
  0xee   : > { %5021 = shalt.err (!%p5018_p10)
}
  0xef   : > { %4640 = dma.hbm_to_vmem [thread:$0]  (!%p5482_p6), %s6146_s20, 16, %s846_s1, [#allocation15]  }
  0xf0   : > { %s5270_s17 = smov [#allocation17]   ;;  %s5022_s26 = scalar_lea.hbm %s6143_s30, 512 }
  0xf1   : > { %s873_s28 = sshll.u32 %s5270_s17, 4  ;;  %p5023_p11 = scmp.ne.s32.totalorder %s6143_s30, %s5022_s26  ;;  %s874_s28 = int_to_ptr.vmem [resolvable:$true] %s873_s28 }
  0xf2   : > { %p5029_p1 = scmp.lt.u32.totalorder %s5022_s26, %s6143_s30 }
  0xf3   : > { %p5025_p12 = pnand %p5023_p11, %p5494_p8 }
  0xf5   : > { %p5026_p13 = pneg %p5025_p12 }
  0xf7   : > { %p5031_p4 = pnand %p5029_p1, %p5026_p13 }
  0xf9   : > { %5034 = shalt.err (!%p5031_p4)
}
  0xfa   : > { %s5035_s15 = scalar_lea.vmem %s874_s28, 512  ;;  %p5043_p5 = scmp.lt.s32.totalorder %s874_s28, %s874_s28 }
  0xfb   : > { %p5036_p3 = scmp.ne.s32.totalorder %s874_s28, %s5035_s15  ;;  %p5044_p7 = scmp.lt.s32.totalorder %s5035_s15, %s5035_s15 }
  0xfd   : > { %p5038_p0 = pnand %p5036_p3, %p5494_p8  ;;  %p5045_p9 = por %p5044_p7, %p5043_p5 }
  0xff   : > { %p5039_p2 = pneg %p5038_p0 }
 0x101   : > { %p5046_p10 = pnand %p5045_p9, %p5039_p2 }
 0x103   : > { %5049 = shalt.err (!%p5046_p10)
}
 0x104   : > { %s5271_s1 = smov 128   ;;  %s5272_s23 = smov 8  }
 0x105   : > { %4643 = dma.hbm_to_vmem [thread:$0]  (!%p5482_p6), %s6143_s30, 512, %s874_s28, [#allocation18], %s5271_s1, %s5271_s1, %s5272_s23  }
 0x106   : > { %s4073_s3 = sadd.s32 4294967294, %s5232_s0   ;;  %s5597_s16 = sadd.s32 1, %s5232_s0  }
 0x107   : > { %s90_s27 = ssub.s32 %s5232_s0, %s5597_s16  ;;  %s93_s17 = sadd.s32 1, %s5228_s11 }
 0x108   : > { %p91_p8 = scmp.eq.s32.totalorder %s90_s27, 0  ;;  %p100_p11 = scmp.ne.s32.totalorder %s5228_s11, %s5224_s10 }
 0x109   : > { %p101_p12 = scmp.eq.s32.totalorder %s5232_s0, 0  ;;  %p106_p13 = scmp.ne.s32.totalorder %s5224_s10, %s5220_s7 }
 0x10a   : > { %s5608_s26 = scalar_select %p91_p8, %s5228_s11, %s93_s17  }
 0x10b   : > { %p5610_p1 = por %p101_p12, %p100_p11  ;;  %p6155_p6 = scmp.eq.s32.totalorder %s5464_s18, 0 }
 0x10c   : > { %p712_p3 = scmp.eq.s32.totalorder %s5464_s18, 1  ;;  %p718_p0 = scmp.eq.s32.totalorder %s4073_s3, 1 }
 0x10d   : > { %p5616_p4 = por %p6155_p6, %p106_p13  ;;  %p4666_p2 = scmp.lt.s32.totalorder %s5232_s0, 2 }
 0x10e   : > { %s902_s28 = sand.u32 1, %s5228_s11   ;;  %p5623_p5 = por %p712_p3, %p100_p11 }
 0x10f   : > { %s6156_s2 = scalar_select %p5616_p4, 1, 0 }
 0x110   : > { %s6157_s1 = scalar_select %p5623_p5, 1, 0 }
 0x111   : > { %p5627_p7 = por %p718_p0, %p106_p13  ;;  %s5631_s27 = sshll.u32 %s902_s28, 3 }
 0x112   : > { %s4085_s17 = sshll.u32 %s5232_s0, 7  ;;  %s906_s3 = scalar_lea.vmem [#allocation2], %s5631_s27 }
 0x113   : > { %s6158_s23 = scalar_select %p5627_p7, 1, 0 }
 0x114   : > { %s5635_s6 = scalar_lea.hbm %s6142_s5, %s4085_s17  ;;  %s913_s14 = sshll.u32 %s906_s3, 4  ;;  %s5638_s14 = int_to_ptr.vmem [resolvable:$true] %s913_s14 }
 0x115   : > { %p5642_p9 = pnand %p4666_p2, %p5610_p1  ;;  %s5647_s20 = scalar_lea.hbm %s5306_s13, %s4085_s17 }
 0x116   : > { %s903_s25 = scalar_lea.sflag [#allocation3], %s902_s28  ;;  %s5050_s30 = scalar_lea.hbm %s5635_s6, 128 }
 0x117   : > { %p5051_p10 = scmp.ne.s32.totalorder %s5635_s6, %s5050_s30  ;;  %p5052_p8 = pneg %p5642_p9 }
 0x118   : > { %s5055_s3 = scalar_lea.hbm %s6142_s5, 256  ;;  %p5056_p13 = scmp.lt.u32.totalorder %s5635_s6, %s6142_s5 }
 0x119   : > { %p5053_p11 = pnand %p5052_p8, %p5051_p10  ;;  %p5057_p1 = scmp.lt.u32.totalorder %s5055_s3, %s5050_s30 }
 0x11a   : > { %p5059_p3 = scmp.lt.u32.totalorder %s5050_s30, %s5635_s6 }
 0x11b   : > { %p5054_p12 = pneg %p5053_p11  ;;  %p5058_p6 = por %p5057_p1, %p5056_p13 }
 0x11d   : > { %p5060_p0 = por %p5059_p3, %p5058_p6 }
 0x11f   : > { %p5061_p2 = pnand %p5060_p0, %p5054_p12 }
 0x121   : > { %5064 = shalt.err (!%p5061_p2)
}
 0x122   : > { %s5065_s15 = scalar_lea.vmem %s5638_s14, 128  ;;  %s5273_s28 = smov [#allocation2]  }
 0x123   : > { %p5066_p7 = scmp.ne.s32.totalorder %s5638_s14, %s5065_s15  ;;  %s5070_s17 = sshll.u32 %s5273_s28, 4  ;;  %s5071_s17 = int_to_ptr.vmem [resolvable:$false] %s5070_s17 }
 0x124   : > { %s5072_s24 = scalar_lea.vmem %s5071_s17, 256  ;;  %p5073_p10 = scmp.lt.s32.totalorder %s5638_s14, %s5071_s17 }
 0x125   : > { %p5068_p5 = pnand %p5066_p7, %p5052_p8  ;;  %p5074_p11 = scmp.lt.s32.totalorder %s5072_s24, %s5065_s15 }
 0x127   : > { %p5069_p4 = pneg %p5068_p5  ;;  %p5075_p13 = por %p5074_p11, %p5073_p10 }
 0x129   : > { %p5076_p1 = pnand %p5075_p13, %p5069_p4 }
 0x12b   : > { %5079 = shalt.err (!%p5076_p1)
}
 0x12c   : > { %4647 = dma.hbm_to_vmem [thread:$0]  (!%p5642_p9), %s5635_s6, 128, %s5638_s14, %s903_s25  }
 0x12d   : > { %s932_s30 = scalar_lea.vmem [#allocation5], %s5631_s27  ;;  %s6160_s24 = sand.u32 1, %s5232_s0  }
 0x12e   : > { %s939_s3 = sshll.u32 %s932_s30, 4  ;;  %s929_s15 = scalar_lea.sflag [#allocation6], %s6160_s24  ;;  %s940_s3 = int_to_ptr.vmem [resolvable:$true] %s939_s3 }
 0x12f   : > { %s5080_s28 = scalar_lea.hbm %s5647_s20, 128  ;;  %s5085_s17 = scalar_lea.hbm %s5306_s13, 256 }
 0x130   : > { %p5081_p4 = scmp.ne.s32.totalorder %s5647_s20, %s5080_s28  ;;  %p5086_p12 = scmp.lt.u32.totalorder %s5647_s20, %s5306_s13 }
 0x131   : > { %p5087_p6 = scmp.lt.u32.totalorder %s5085_s17, %s5080_s28  ;;  %p5089_p0 = scmp.lt.u32.totalorder %s5080_s28, %s5647_s20 }
 0x132   : > { %p5083_p5 = pnand %p5081_p4, %p5052_p8 }
 0x133   : > { %p5088_p3 = por %p5087_p6, %p5086_p12 }
 0x134   : > { %p5084_p7 = pneg %p5083_p5 }
 0x135   : > { %p5090_p2 = por %p5089_p0, %p5088_p3 }
 0x137   : > { %p5091_p10 = pnand %p5090_p2, %p5084_p7 }
 0x139   : > { %5094 = shalt.err (!%p5091_p10)
}
 0x13a   : > { %s5095_s25 = scalar_lea.vmem %s940_s3, 128  ;;  %s5274_s14 = smov [#allocation5]  }
 0x13b   : > { %p5096_p11 = scmp.ne.s32.totalorder %s940_s3, %s5095_s25  ;;  %s5100_s6 = sshll.u32 %s5274_s14, 4  ;;  %s5101_s6 = int_to_ptr.vmem [resolvable:$false] %s5100_s6 }
 0x13c   : > { %s5102_s27 = scalar_lea.vmem %s5101_s6, 256  ;;  %p5103_p4 = scmp.lt.s32.totalorder %s940_s3, %s5101_s6 }
 0x13d   : > { %p5098_p13 = pnand %p5096_p11, %p5052_p8  ;;  %p5104_p5 = scmp.lt.s32.totalorder %s5102_s27, %s5095_s25 }
 0x13f   : > { %p5099_p1 = pneg %p5098_p13  ;;  %p5105_p6 = por %p5104_p5, %p5103_p4 }
 0x141   : > { %p5106_p12 = pnand %p5105_p6, %p5099_p1 }
 0x143   : > { %5109 = shalt.err (!%p5106_p12)
}
 0x144   : > { %4650 = dma.hbm_to_vmem [thread:$0]  (!%p5642_p9), %s5647_s20, 128, %s940_s3, %s929_s15  }
 0x145   : > { %p6161_p7 = scmp.ne.s32.totalorder %s6151_s22, 0 }
 0x146   : > { %s5692_s30 = sand.u32 (!%p6161_p7), 1, %s5224_s10   ;;  %p6162_p8 = scmp.ne.s32.totalorder (!%p6161_p7), %s6156_s2, 0 }
 0x147   : > { %956 = sbr.rel (%p6161_p7) target bundleno = 7090 (0x1bb2), region = 132  ;;  %s5695_s24 = sshll.u32 (!%p6161_p7), %s5692_s30, 3 }
 0x148   : > { %s959_s28 = scalar_lea.sflag (!%p6161_p7), [#allocation3], %s5692_s30  ;;  %s962_s17 = scalar_lea.vmem (!%p6161_p7), [#allocation2], %s5695_s24 }
 0x14e   : > { %5183 = dma.done.wait (%p6162_p8), %s959_s28, 128  }
 0x14f   : > { %5185 = vsyncadd (%p6162_p8), %s959_s28, 4294967168  ;;  %s967_s19 = sand.u32 1, %s5464_s18   ;;  %s971_s22 = scalar_lea.vmem [#allocation5], %s5695_s24 }
 0x150   : > { %s968_s20 = scalar_lea.sflag [#allocation6], %s967_s19 }
 0x151   : > { %5187 = dma.done.wait (%p6162_p8), %s968_s20, 128  }
 0x152   : > { %5189 = vsyncadd (%p6162_p8), %s968_s20, 4294967168  ;;  %p6163_p9 = scmp.eq.s32.totalorder %s5464_s18, 0 }
 0x154   : > { %5191 = dma.done.wait (%p6163_p9), [#allocation6], 16   ;;  %p6164_p3 = pmov %p6163_p9 }
 0x156   : > { %5193 = vsyncadd (%p6164_p3), [#allocation6], 4294967280  ;;  %p6165_p0 = pmov %p6164_p3 }
 0x158   : > { %5195 = dma.done.wait (%p6165_p0), [#allocation9], 32   ;;  %p6166_p2 = pmov %p6165_p0 }
 0x159   : > { %p6167_p10 = pmov %p6165_p0 }
 0x15a   : > { %5197 = vsyncadd (%p6166_p2), [#allocation9], 4294967264 }
 0x15b   : > { %5199 = dma.done.wait (%p6167_p10), [#allocation12], 32   ;;  %p6168_p11 = pmov %p6165_p0 }
 0x15c   : > { %p6169_p13 = pmov %p6165_p0 }
 0x15d   : > { %5201 = vsyncadd (%p6168_p11), [#allocation12], 4294967264 }
 0x15e   : > { %5203 = dma.done.wait (%p6169_p13), [#allocation15], 32   ;;  %p6170_p1 = pmov %p6165_p0 }
 0x15f   : > { %p6171_p4 = pmov %p6165_p0 }
 0x160   : > { %5205 = vsyncadd (%p6170_p1), [#allocation15], 4294967264 }
 0x161   : > { %5207 = dma.done.wait (%p6171_p4), [#allocation18], 512   ;;  %p6172_p5 = pmov %p6165_p0 }
 0x162   : > { %v5275_v0 = vmov 0.0|0.0   ;;  %vm5276_vm0 = vmmov 0   ;;  %v5277_v1 = vmov 0.0   ;;  %v1115_v2 = vld [vmem:[%s5316_s21] sm:$0xff]  ;;  %v1116_v3 = vld [vmem:[%s5316_s21 + $0x8] sm:$0xff]  ;;  %v1117_v4 = vld [vmem:[%s5316_s21 + $0x10] sm:$0xff] }
 0x163   : > { %5209 = vsyncadd (%p6172_p5), [#allocation18], 4294966784  ;;  %4495 = vmatprep.subr.bf16.mxu0 %v5275_v0  ;;  %4282 = vmatprep.mubr.msk.f32.mxu0 %vm5276_vm0, %v5277_v1  ;;  %v4496_v5 = vpack.c.bf16 %v1116_v3, %v1115_v2  ;;  %v1118_v6 = vld [vmem:[%s5316_s21 + $0x18] sm:$0xff]  ;;  %v5741_v8 = vld [vmem:[%s962_s17] sm:$0xff]  ;;  %vm1126_vm1 = vcmask 261120   ;;  %s5278_s2 = smov 88  }
 0x164   : > { %4501 = vmatprep.subr.bf16.mxu1 %v5275_v0  ;;  %4293 = vmatprep.mubr.msk.f32.mxu1 %vm5276_vm0, %v5277_v1  ;;  %v4499_v7 = vpack.c.bf16 %v1118_v6, %v1117_v4  ;;  %v5743_v9 = vld [vmem:[%s971_s22] sm:$0xff]  ;;  %v4105_v11 = vld [vmem:[#allocation7] ss:$0 sm:$0xff]  ;;  %s5279_s3 = smov 96   ;;  %vm1288_vm2 = vcmask 64512   ;;  %v1202_v18 = vld [vmem:[%s5326_s29 + $0x8] sm:$0xff] }
 0x165   : > { %4497 = vmatpush3.bf16.msra.mxu0 %v4496_v5  ;;  %v1114_v10 = vadd.f32 %v5743_v9, %v5741_v8  ;;  %v1201_v17 = vld [vmem:[%s5326_s29] sm:$0xff]  ;;  %v1203_v19 = vld [vmem:[%s5326_s29 + $0x10] sm:$0xff]  ;;  %v1204_v21 = vld [vmem:[%s5326_s29 + $0x18] sm:$0xff]  ;;  %s5280_s15 = smov 120   ;;  %s5281_s25 = smov 112   ;;  %vm2632_vm4 = vcmask 80896  }
 0x166   : > { %4498 = vmatprep.subr.bf16.mxu0 %v5275_v0  ;;  %v4502_v20 = vpack.c.bf16 %v1202_v18, %v1201_v17  ;;  %v4505_v22 = vpack.c.bf16 %v1204_v21, %v1203_v19  ;;  %v4107_v31 = vld [vmem:[#allocation8] ss:$0 sm:$0xff]  ;;  %s5282_s14 = smov 80   ;;  %v1615_v50 = vld [vmem:[%s5336_s8 + $0x8] sm:$0xff]  ;;  %s5283_s6 = smov 104   ;;  %vm5880_vm3 = vmpackc.low %vm1288_vm2, %vm1288_vm2  ;;  %vm2647_vm5 = vcmask 1041408  }
 0x167   : > { %v1448_v55 = vld [vmem:[%s5336_s8] sm:$0xff]  ;;  %s5284_s27 = smov 72   ;;  %s6173_s28 = sld [smem:[#allocation32_spill]]  ;;  %vm5285_vm6 = vmmov 1   ;;  %vm3681_vm8 = vcmask 523264  }
 0x168   : > { %4503 = vmatpush3.bf16.msra.mxu1 %v4502_v20  ;;  %s6174_s17 = sld [smem:[#allocation33_spill]]  ;;  %p1098_p6 = scmp.lt.s32.totalorder %s5464_s18, 1  ;;  %vm5919_vm7 = vmpackc.low %vm2647_vm5, %vm5285_vm6 }
 0x169   : > { %4500 = vmatpush3.bf16.msra.mxu0 %v4499_v7  ;;  %4504 = vmatprep.subr.bf16.mxu1 %v5275_v0  ;;  %s6175_s20 = sld [smem:[#allocation39_spill]]  ;;  %p6189_p7 = scmp.ne.s32.totalorder %s6157_s1, 0 }
 0x16a   : > { %4296 = vmatprep.subr.mxu0 %v5277_v1  ;;  %s1099_s19 = scalar_select %p1098_p6, %s5464_s18, 1 }
 0x16c   : > { %4283 = vmatmul.mubr.msk.f32.vlgmr.msra.gmra.mrb[0].mxu0 %vm1126_vm1, %v1114_v10  ;;  %4506 = vmatpush3.bf16.msra.mxu1 %v4505_v22  ;;  %s4175_s22 = sshll.u32 %s1099_s19, 4  ;;  %s6186_s19 = sld [smem:[#allocation47_spill]] }
 0x16d   : > { %4298 = vmatprep.mubr.msk.f32.mxu0 %vm5276_vm0, %v5277_v1  ;;  %4311 = vmatprep.subr.mxu1 %v5277_v1 }
 0x16f   : > { %4294 = vmatmul.mubr.msk.f32.vlgmr.msra.gmra.mrb[0].mxu1 %vm1126_vm1, %v5741_v8 }
 0x170   : > { %4313 = vmatprep.mubr.msk.f32.mxu1 %vm5276_vm0, %v5277_v1 }
 0x23f   : > { %v1196_v12 = vpop.f32.mrb[0].mxu0 }
 0x240   : > { %v5752_v13 = vadd.f32 %v4105_v11, %v1196_v12  ;;  %v4284_v14 = vpop.f32.mrb[1].mxu0 }
 0x242   : > { %1451 = vrot.lane.b32.xlu1 %v5752_v13, %s5278_s2  ;;  %1286 = vrot.lane.b32.xlu0 %v5752_v13, %s5279_s3  ;;  %v5758_v16 = vmul.f32 0.35355338, %v5752_v13  ;;  %v1281_v32 = vpop.f32.mrb[0].mxu1  ;;  %s1102_s2 = scalar_lea.vmem %s6173_s28, %s4175_s22  ;;  %s1107_s3 = scalar_lea.vmem %s6174_s17, %s4175_s22 }
 0x243   : > { %v5779_v33 = vadd.f32 %v4107_v31, %v1281_v32  ;;  %v4295_v34 = vpop.f32.mrb[1].mxu1  ;;  %v2167_v31 = vld [vmem:[%s5336_s8 + $0x18] sm:$0xff]  ;;  %s6182_s28 = sld [smem:[#allocation44_spill]]  ;;  %s6185_s17 = sld [smem:[#allocation46_spill]] }
 0x244   : > { %s6187_s22 = sld [smem:[#allocation49_spill]] }
 0x2b4   : > { %v1287_v15 = vpop.permute.xlu0 %1286  ;;  %v1452_v35 = vpop.permute.xlu1 %1451 }
 0x2b5   : > { %4297 = vmatpush3.xpose.msk.msra.mxu0 %vm1288_vm2, %v1287_v15 }
 0x2b6   : > { %4301 = vmatprep.subr.mxu0 %v5277_v1 }
 0x2b8   : > { %4299 = vmatmul.mubr.msk.f32.vlgmr.msra.gmra.mrb[2].mxu0 %vm1288_vm2, %v5758_v16 }
 0x2b9   : > { %4303 = vmatprep.mubr.msk.f32.mxu0 %vm5276_vm0, %v5277_v1  ;;  %4302 = vmatpush3.msra.mxu0 %v5779_v33 }
 0x2ba   : > { %4306 = vmatprep.subr.mxu0 %v5277_v1 }
 0x38b   : > { %v1360_v23 = vpop.f32.mrb[2].mxu0 }
 0x38c   : > { %v4300_v24 = vpop.f32.mrb[3].mxu0  ;;  %v1364_v25 = vsel %vm1288_vm2, %v1360_v23, -inf }
 0x38d   : > { %1365 = vmax.xlane.f32.xlu0 %v1364_v25 }
 0x41a   : > { %v1366_v26 = vpop.xlane.xlu0 %1365 }
 0x41b   : > { %v1367_v27 = vsub.f32 %v1360_v23, %v1366_v26 }
 0x41d   : > { %v1368_v28 = vmul.f32 1.442695, %v1367_v27 }
 0x41f   : > { %4788 = vpow2.f32 %v1368_v28 }
 0x429   : > { %v4789_v29 = vpop.eup %4788 }
 0x42a   : > { %v1370_v30 = vsel %vm1288_vm2, %v4789_v29, 0.0 }
 0x42b   : > { %1371 = vadd.xlane.f32.xlu1 %v1370_v30 }
 0x43c   : > { %1449 = vrot.lane.b32.xlu1 %v5758_v16, %s5280_s15 }
 0x4b8   : > { %v1372_v36 = vpop.xlane.xlu1 %1371 }
 0x4b9   : > { %4790 = vrcp.f32 %v1372_v36 }
 0x4bc   : > { %v1450_v39 = vpop.permute.xlu1 %1449 }
 0x4c3   : > { %v4791_v37 = vpop.eup %4790 }
 0x4c4   : > { %v1374_v38 = vmul.f32 %v4791_v37, %v4789_v29 }
 0x4c6   : > { %4304 = vmatmul.mubr.msk.f32.vlgmr.msra.gmra.mrb[4].mxu0 %vm1288_vm2, %v1374_v38 }
 0x4c7   : > { %4307 = vmatpush3.xpose.msk.msra.mxu0 %vm1288_vm2, %v1452_v35  ;;  %4308 = vmatprep.mubr.msk.f32.mxu0 %vm5276_vm0, %v5277_v1 }
 0x4c8   : > { %4316 = vmatprep.subr.mxu0 %v5277_v1 }
 0x4ca   : > { %4309 = vmatmul.mubr.msk.f32.vlgmr.msra.gmra.mrb[6].mxu0 %vm1288_vm2, %v1450_v39 }
 0x4cb   : > { %4318 = vmatprep.mubr.msk.f32.mxu0 %vm5276_vm0, %v5277_v1  ;;  %4317 = vmatpush3.msra.mxu0 %v1615_v50 }
 0x4cc   : > { %4326 = vmatprep.subr.mxu0 %v5277_v1 }
 0x599   : > { %v1444_v40 = vpop.f32.mrb[4].mxu0 }
 0x59a   : > { %v4305_v41 = vpop.f32.mrb[5].mxu0 }
 0x59d   : > { %v1523_v42 = vpop.f32.mrb[6].mxu0 }
 0x59e   : > { %v4310_v43 = vpop.f32.mrb[7].mxu0  ;;  %v1527_v44 = vsel %vm1288_vm2, %v1523_v42, -inf }
 0x59f   : > { %1528 = vmax.xlane.f32.xlu1 %v1527_v44  ;;  %v4125_v43 = vld [vmem:[#allocation10] ss:$0 sm:$0xff] }
 0x5b0   : > { %1762 = vrot.lane.b32.xlu1 %v5758_v16, %s5281_s25 }
 0x62c   : > { %v1529_v45 = vpop.xlane.xlu1 %1528 }
 0x62d   : > { %v1530_v46 = vsub.f32 %v1523_v42, %v1529_v45 }
 0x62f   : > { %v1531_v47 = vmul.f32 1.442695, %v1530_v46 }
 0x630   : > { %v1763_v59 = vpop.permute.xlu1 %1762 }
 0x631   : > { %4792 = vpow2.f32 %v1531_v47 }
 0x63b   : > { %v4793_v48 = vpop.eup %4792 }
 0x63c   : > { %v1533_v49 = vsel %vm1288_vm2, %v4793_v48, 0.0 }
 0x63d   : > { %1534 = vadd.xlane.f32.xlu0 %v1533_v49 }
 0x653   : > { %1539 = vrot.lane.b32.xlu0 %v5779_v33, %s5280_s15 }
 0x657   : > { %1764 = vrot.lane.b32.xlu0 %v5752_v13, %s5282_s14  ;;  %s6178_s14 = sld [smem:[#allocation42_spill]] }
 0x6ca   : > { %v1535_v51 = vpop.xlane.xlu0 %1534 }
 0x6cb   : > { %4794 = vrcp.f32 %v1535_v51 }
 0x6ce   : > { %v1540_v52 = vpop.permute.xlu0 %1539 }
 0x6cf   : > { %4312 = vmatpush3.msra.mxu1 %v1540_v52  ;;  %v2369_v52 = vld [vmem:[%s5366_s12] sm:$0xff] }
 0x6d0   : > { %4321 = vmatprep.subr.mxu1 %v5277_v1 }
 0x6d2   : > { %v1765_v57 = vpop.permute.xlu0 %1764 }
 0x6d5   : > { %v4795_v53 = vpop.eup %4794 }
 0x6d6   : > { %v1537_v54 = vmul.f32 %v4795_v53, %v4793_v48  ;;  %v2370_v53 = vld [vmem:[%s5366_s12 + $0x8] sm:$0xff] }
 0x6d8   : > { %4314 = vmatmul.mubr.msk.f32.vlgmr.msra.gmra.mrb[2].mxu1 %vm1288_vm2, %v1537_v54  ;;  %v4513_v54 = vpack.c.bf16 %v2370_v53, %v2369_v52 }
 0x6d9   : > { %4322 = vmatpush3.msra.mxu1 %v1448_v55  ;;  %4323 = vmatprep.mubr.msk.f32.mxu1 %vm5276_vm0, %v5277_v1  ;;  %v2372_v55 = vld [vmem:[%s5366_s12 + $0x18] sm:$0xff] }
 0x6da   : > { %4331 = vmatprep.subr.mxu1 %v5277_v1 }
 0x6dc   : > { %4324 = vmatmul.mubr.msk.f32.vlgmr.msra.gmra.mrb[4].mxu1 %vm1288_vm2, %v1444_v40 }
 0x6dd   : > { %4333 = vmatprep.mubr.msk.f32.mxu1 %vm5276_vm0, %v5277_v1 }
 0x7ab   : > { %v1611_v56 = vpop.f32.mrb[2].mxu1 }
 0x7ac   : > { %v4315_v58 = vpop.f32.mrb[3].mxu1  ;;  %4319 = vmatmul.mubr.msk.f32.vlgmr.msra.gmra.mrb[8].mxu0 %vm1288_vm2, %v1611_v56 }
 0x7ad   : > { %4327 = vmatpush3.xpose.msk.msra.mxu0 %vm1288_vm2, %v1765_v57  ;;  %4328 = vmatprep.mubr.msk.f32.mxu0 %vm5276_vm0, %v5277_v1  ;;  %v1109_v57 = vld [vmem:[%s1102_s2] sm:$0xff] }
 0x7ae   : > { %4336 = vmatprep.subr.mxu0 %v5277_v1  ;;  %v1112_v58 = vld [vmem:[%s1107_s3] sm:$0xff] }
 0x7af   : > { %v1758_v60 = vpop.f32.mrb[4].mxu1 }
 0x7b0   : > { %v4325_v61 = vpop.f32.mrb[5].mxu1  ;;  %4329 = vmatmul.mubr.msk.f32.vlgmr.msra.gmra.mrb[10].mxu0 %vm1288_vm2, %v1763_v59  ;;  %v5859_v59 = vld [vmem:[%s1102_s2 + $0x8] sm:$0x3]  ;;  %s6188_s2 = sld [smem:[#allocation51_spill]] }
 0x7b1   : > { %4338 = vmatprep.mubr.msk.f32.mxu0 %vm5276_vm0, %v5277_v1  ;;  %v2282_v61 = vadd.f32 %v1112_v58, %v1109_v57 }
 0x87f   : > { %v1685_v62 = vpop.f32.mrb[8].mxu0 }
 0x880   : > { %v1759_v63 = vadd.f32 %v1758_v60, %v1685_v62  ;;  %v4320_v2 = vpop.f32.mrb[9].mxu0  ;;  %v1113_v60 = vld [vmem:[%s1107_s3 + $0x8] sm:$0x3]  ;;  %s4171_s3 = sshll.u32 %s5464_s18, 7 }
 0x881   : > { %v2283_v62 = vadd.f32 %v1113_v60, %v5859_v59  ;;  %v2285_v2 = vld [vmem:[%s6175_s20 + $0x8] sm:$0xff] }
 0x883   : > { %v1836_v3 = vpop.f32.mrb[10].mxu0 }
 0x884   : > { %v4330_v4 = vpop.f32.mrb[11].mxu0  ;;  %v1840_v5 = vsel %vm1288_vm2, %v1836_v3, -inf }
 0x885   : > { %1841 = vmax.xlane.f32.xlu0 %v1840_v5  ;;  %v2286_v4 = vld [vmem:[%s6175_s20 + $0x10] sm:$0xff]  ;;  %v2287_v5 = vld [vmem:[%s6175_s20 + $0x18] sm:$0xff] }
 0x89b   : > { %1851 = vrot.lane.b32.xlu0 %v5779_v33, %s5281_s25 }
 0x89f   : > { %2002 = vrot.lane.b32.xlu0 %v5758_v16, %s5283_s6 }
 0x912   : > { %v1842_v6 = vpop.xlane.xlu0 %1841 }
 0x913   : > { %v1843_v7 = vsub.f32 %v1836_v3, %v1842_v6  ;;  %v4511_v6 = vpack.c.bf16 %v2287_v5, %v2286_v4 }
 0x915   : > { %v1844_v10 = vmul.f32 1.442695, %v1843_v7 }
 0x916   : > { %v1852_v11 = vpop.permute.xlu0 %1851 }
 0x917   : > { %4796 = vpow2.f32 %v1844_v10  ;;  %4332 = vmatpush3.msra.mxu1 %v1852_v11 }
 0x918   : > { %4341 = vmatprep.subr.mxu1 %v5277_v1 }
 0x91a   : > { %v2003_v19 = vpop.permute.xlu0 %2002 }
 0x921   : > { %v4797_v12 = vpop.eup %4796 }
 0x922   : > { %v1846_v14 = vsel %vm1288_vm2, %v4797_v12, 0.0 }
 0x923   : > { %1847 = vadd.xlane.f32.xlu1 %v1846_v14  ;;  %v4126_v14 = vld [vmem:[#allocation11] ss:$0 sm:$0xff] }
 0x934   : > { %2004 = vrot.lane.b32.xlu1 %v5752_v13, %s5284_s27  ;;  %v1927_v13 = vld [vmem:[%s5336_s8 + $0x10] sm:$0xff]  ;;  %s6179_s27 = sld [smem:[#allocation43_spill]] }
 0x935   : > { %4337 = vmatpush3.msra.mxu0 %v1927_v13  ;;  %v4130_v13 = vld [vmem:[#allocation16] ss:$0 sm:$0xff] }
 0x936   : > { %4346 = vmatprep.subr.mxu0 %v5277_v1 }
 0x93a   : > { %v4133_v52 = vld [vmem:[%s6179_s27] ss:$0 sm:$0xff]  ;;  %s6035_s27 = scalar_lea.hbm %s5441_s4, %s4171_s3 }
 0x9b0   : > { %v1848_v15 = vpop.xlane.xlu1 %1847 }
 0x9b1   : > { %4798 = vrcp.f32 %v1848_v15 }
 0x9b4   : > { %v2005_v18 = vpop.permute.xlu1 %2004 }
 0x9bb   : > { %v4799_v17 = vpop.eup %4798 }
 0x9bc   : > { %v1850_v16 = vmul.f32 %v4799_v17, %v4797_v12  ;;  %v4127_v17 = vld [vmem:[#allocation13] ss:$0 sm:$0xff] }
 0x9be   : > { %4334 = vmatmul.mubr.msk.f32.vlgmr.msra.gmra.mrb[6].mxu1 %vm1288_vm2, %v1850_v16 }
 0x9bf   : > { %4342 = vmatpush3.xpose.msk.msra.mxu1 %vm1288_vm2, %v2005_v18  ;;  %4343 = vmatprep.mubr.msk.f32.mxu1 %vm5276_vm0, %v5277_v1 }
 0x9c0   : > { %4351 = vmatprep.subr.mxu1 %v5277_v1 }
 0x9c2   : > { %4344 = vmatmul.mubr.msk.f32.vlgmr.msra.gmra.mrb[8].mxu1 %vm1288_vm2, %v2003_v19 }
 0x9c3   : > { %4353 = vmatprep.mubr.msk.f32.mxu1 %vm5276_vm0, %v5277_v1  ;;  %4352 = vmatpush3.msra.mxu1 %v2167_v31 }
 0x9c4   : > { %4514 = vmatprep.subr.bf16.mxu1 %v4513_v54 }
 0xa91   : > { %v1923_v20 = vpop.f32.mrb[6].mxu1 }
 0xa92   : > { %v4335_v21 = vpop.f32.mrb[7].mxu1  ;;  %4339 = vmatmul.mubr.msk.f32.vlgmr.msra.gmra.mrb[12].mxu0 %vm1288_vm2, %v1923_v20 }
 0xa93   : > { %4348 = vmatprep.mubr.msk.f32.mxu0 %vm5276_vm0, %v5277_v1 }
 0xa95   : > { %v2076_v22 = vpop.f32.mrb[8].mxu1 }
 0xa96   : > { %v4345_v23 = vpop.f32.mrb[9].mxu1  ;;  %v2080_v24 = vsel %vm1288_vm2, %v2076_v22, -inf }
 0xa97   : > { %2081 = vmax.xlane.f32.xlu0 %v2080_v24 }
 0xaad   : > { %2091 = vrot.lane.b32.xlu0 %v5779_v33, %s5283_s6 }
 0xb24   : > { %v2082_v25 = vpop.xlane.xlu0 %2081 }
 0xb25   : > { %v2083_v26 = vsub.f32 %v2076_v22, %v2082_v25 }
 0xb27   : > { %v2084_v27 = vmul.f32 1.442695, %v2083_v26 }
 0xb28   : > { %v2092_v28 = vpop.permute.xlu0 %2091 }
 0xb29   : > { %4800 = vpow2.f32 %v2084_v27  ;;  %4347 = vmatpush3.msra.mxu0 %v2092_v28  ;;  %v4128_v27 = vld [vmem:[#allocation14] ss:$0 sm:$0xff] }
 0xb2a   : > { %4507 = vmatprep.subr.bf16.mxu0 %v5275_v0 }
 0xb33   : > { %v4801_v29 = vpop.eup %4800 }
 0xb34   : > { %v2086_v30 = vsel %vm1288_vm2, %v4801_v29, 0.0 }
 0xb35   : > { %2087 = vadd.xlane.f32.xlu1 %v2086_v30 }
 0xb65   : > { %v1997_v32 = vpop.f32.mrb[12].mxu0 }
 0xb66   : > { %v2001_v34 = vadd.f32 %v1997_v32, %v1759_v63  ;;  %v4340_v35 = vpop.f32.mrb[13].mxu0  ;;  %v2284_v63 = vld [vmem:[%s6175_s20] sm:$0xff] }
 0xb67   : > { %v4508_v3 = vpack.c.bf16 %v2285_v2, %v2284_v63 }
 0xbc2   : > { %v2088_v36 = vpop.xlane.xlu1 %2087 }
 0xbc3   : > { %4802 = vrcp.f32 %v2088_v36  ;;  %v2461_v36 = vld [vmem:[%s6178_s14] sm:$0xff] }
 0xbcd   : > { %v4803_v33 = vpop.eup %4802 }
 0xbce   : > { %v2090_v37 = vmul.f32 %v4803_v33, %v4801_v29  ;;  %v2462_v33 = vld [vmem:[%s6178_s14 + $0x8] sm:$0xff] }
 0xbd0   : > { %4349 = vmatmul.mubr.msk.f32.vlgmr.msra.gmra.mrb[14].mxu0 %vm1288_vm2, %v2090_v37  ;;  %v2463_v37 = vld [vmem:[%s6178_s14 + $0x10] sm:$0xff] }
 0xbd1   : > { %4364 = vmatprep.mubr.msk.f32.mxu0 %vm5276_vm0, %v5277_v1  ;;  %4509 = vmatpush3.bf16.msra.mxu0 %v4508_v3 }
 0xbd2   : > { %4510 = vmatprep.subr.bf16.mxu0 %v5275_v0 }
 0xbd5   : > { %4512 = vmatpush3.bf16.msra.mxu0 %v4511_v6  ;;  %v2721_v6 = vld [vmem:[%s6182_s28] sm:$0xff] }
 0xca3   : > { %v2163_v38 = vpop.f32.mrb[14].mxu0 }
 0xca4   : > { %v4350_v39 = vpop.f32.mrb[15].mxu0  ;;  %4354 = vmatmul.mubr.msk.f32.vlgmr.msra.gmra.mrb[10].mxu1 %vm1288_vm2, %v2163_v38  ;;  %v4521_v38 = vpack.c.bf16 %v2462_v33, %v2461_v36 }
 0xca5   : > { %4516 = vmatpush3.bf16.msra.mxu1 %v4513_v54  ;;  %4375 = vmatprep.mubr.msk.f32.mxu1 %vm1126_vm1, %v2282_v61  ;;  %v2464_v39 = vld [vmem:[%s6178_s14 + $0x18] sm:$0xff] }
 0xca6   : > { %4522 = vmatprep.subr.bf16.mxu0 %v4521_v38 }
 0xd77   : > { %v2237_v40 = vpop.f32.mrb[10].mxu1 }
 0xd78   : > { %v2241_v41 = vadd.f32 %v2237_v40, %v2001_v34  ;;  %v4355_v42 = vpop.f32.mrb[11].mxu1  ;;  %v4525_v40 = vpack.c.bf16 %v2464_v39, %v2463_v37 }
 0xd7a   : > { %v2242_v44 = vadd.f32 %v2241_v41, %v5741_v8  ;;  %v2371_v8 = vld [vmem:[%s5366_s12 + $0x10] sm:$0xff] }
 0xd7b   : > { %v4517_v56 = vpack.c.bf16 %v2372_v55, %v2371_v8 }
 0xd7c   : > { %v2250_v45 = vadd.f32 %v4125_v43, %v2242_v44 }
 0xd7d   : > { %4518 = vmatprep.subr.bf16.mxu1 %v4517_v56 }
 0xd7e   : > { %v2253_v46 = vsel %vm1126_vm1, %v2250_v45, 0.0  ;;  %4520 = vmatpush3.bf16.msra.mxu1 %v4517_v56 }
 0xd7f   : > { %2254 = vadd.xlane.f32.xlu1 %v2253_v46  ;;  %4529 = vmatprep.subr.bf16.mxu1 %v5275_v0 }
 0xd81   : > { %4376 = vmatmul.mubr.msk.f32.vlgmr.msra.gmra.mrb[12].mxu1 %vm1126_vm1, %v2283_v62 }
 0xd82   : > { %4393 = vmatprep.mubr.msk.f32.mxu1 %vm5276_vm0, %v5277_v1 }
 0xe0c   : > { %v2255_v47 = vpop.xlane.xlu1 %2254 }
 0xe0d   : > { %v2257_v48 = vmul.f32 0.03125, %v2255_v47 }
 0xe0f   : > { %v2258_v49 = vsub.f32 %v2250_v45, %v2257_v48 }
 0xe11   : > { %v2259_v50 = vmul.f32 %v2258_v49, %v2258_v49 }
 0xe13   : > { %v2260_v51 = vsel %vm1126_vm1, %v2259_v50, 0.0 }
 0xe14   : > { %2261 = vadd.xlane.f32.xlu1 %v2260_v51 }
 0xe54   : > { %v4377_v20 = vpop.f32.mrb[12].mxu1 }
 0xe55   : > { %v2458_v21 = vadd.f32 %v4377_v20, %v4130_v13  ;;  %v2452_v22 = vpop.f32.mrb[13].mxu1 }
 0xe56   : > { %v2453_v23 = vadd.f32 %v4130_v13, %v2452_v22 }
 0xe58   : > { %v4530_v25 = vpack.c.bf16 %v2458_v21, %v2453_v23  ;;  %v5884_v26 = vpack.i.bf16 %v2458_v21, %v2453_v23 }
 0xe5a   : > { %4759 = vrot.lane.b32.xlu0 %v5884_v26, %s5280_s15  ;;  %4532 = vmatpush3.bf16.xpose.msk.msra.mxu1 %vm5880_vm3, %v4530_v25 }
 0xe5b   : > { %4537 = vmatprep.subr.bf16.mxu1 %v5275_v0 }
 0xea1   : > { %v2262_v7 = vpop.xlane.xlu1 %2261 }
 0xea2   : > { %v2263_v10 = vmul.f32 0.03125, %v2262_v7 }
 0xea4   : > { %v2264_v11 = vadd.f32 1e-05, %v2263_v10 }
 0xea6   : > { %4804 = vrsqrt.f32 %v2264_v11 }
 0xeb0   : > { %v4805_v12 = vpop.eup %4804 }
 0xeb1   : > { %v2266_v15 = vmul.f32 %v4805_v12, %v2258_v49 }
 0xeb3   : > { %v2273_v16 = vmul.f32 %v4126_v14, %v2266_v15 }
 0xeb5   : > { %v5872_v18 = vadd.f32 %v4127_v17, %v2273_v16  ;;  %v2896_v16 = vld [vmem:[%s6182_s28 + $0x8] sm:$0xff] }
 0xeb7   : > { %v2281_v19 = vadd.f32 %v5872_v18, %v5743_v9 }
 0xeb9   : > { %4365 = vmatmul.mubr.msk.f32.vlgmr.msra.gmra.mrb[16].mxu0 %vm1126_vm1, %v2281_v19 }
 0xeba   : > { %4386 = vmatprep.mubr.msk.f32.mxu0 %vm1126_vm1, %v1109_v57  ;;  %4524 = vmatpush3.bf16.msra.mxu0 %v4521_v38 }
 0xebb   : > { %4526 = vmatprep.subr.bf16.mxu0 %v4525_v40 }
 0xebe   : > { %4528 = vmatpush3.bf16.msra.mxu0 %v4525_v40 }
 0xebf   : > { %4533 = vmatprep.subr.bf16.mxu0 %v5275_v0 }
 0xec1   : > { %4387 = vmatmul.mubr.msk.f32.vlgmr.msra.gmra.mrb[18].mxu0 %vm1126_vm1, %v5859_v59 }
 0xec2   : > { %4400 = vmatprep.mubr.msk.f32.mxu0 %vm5276_vm0, %v5277_v1 }
 0xecc   : > { %v4760_v9 = vpop.permute.xlu0 %4759 }
 0xecd   : > { %v4762_v28 = vunpack.i.h.bf16 %v4760_v9  ;;  %v4761_v29 = vunpack.i.l.bf16 %v4760_v9 }
 0xecf   : > { %v4538_v34 = vpack.c.bf16 %v4762_v28, %v4761_v29 }
 0xf8c   : > { %v2364_v30 = vpop.f32.mrb[16].mxu0 }
 0xf8d   : > { %v2365_v31 = vadd.f32 %v4128_v27, %v2364_v30  ;;  %v4366_v32 = vpop.f32.mrb[17].mxu0 }
 0xf8f   : > { %v2368_v35 = vmul.f32 0.35355338, %v2365_v31 }
 0xf91   : > { %2722 = vrot.lane.b32.xlu1 %v2368_v35, %s5280_s15  ;;  %4394 = vmatmul.mubr.msk.f32.vlgmr.msra.gmra.mrb[14].mxu1 %vm1288_vm2, %v2368_v35 }
 0xf92   : > { %4540 = vmatpush3.bf16.xpose.msk.msra.mxu1 %vm5880_vm3, %v4538_v34  ;;  %4407 = vmatprep.mubr.msk.f32.mxu1 %vm5276_vm0, %v5277_v1 }
 0xf93   : > { %4422 = vmatprep.subr.mxu1 %v5277_v1 }
 0xf94   : > { %v4388_v51 = vpop.f32.mrb[18].mxu0 }
 0xf95   : > { %v2550_v53 = vadd.f32 %v4388_v51, %v4133_v52  ;;  %v2544_v54 = vpop.f32.mrb[19].mxu0 }
 0xf96   : > { %v2545_v8 = vadd.f32 %v4133_v52, %v2544_v54 }
 0xf98   : > { %v4534_v55 = vpack.c.bf16 %v2550_v53, %v2545_v8  ;;  %v5916_v56 = vpack.i.bf16 %v2550_v53, %v2545_v8 }
 0xf9a   : > { %4536 = vmatpush3.bf16.msk.msra.mxu0 %vm5919_vm7, %v4534_v55 }
 0xf9b   : > { %4541 = vmatprep.subr.bf16.mxu0 %v5275_v0 }
0x1003   : > { %v2723_v41 = vpop.permute.xlu1 %2722 }
0x1004   : > { %4408 = vmatmul.mubr.msk.f32.vlgmr.msra.gmra.mrb[16].mxu1 %vm1288_vm2, %v2723_v41 }
0x1005   : > { %4424 = vmatprep.mubr.msk.f32.mxu1 %vm5276_vm0, %v5277_v1  ;;  %4423 = vmatpush3.msra.mxu1 %v2721_v6 }
0x1006   : > { %4549 = vmatprep.subr.bf16.mxu1 %v5275_v0 }
0x1064   : > { %v2628_v42 = vpop.f32.mrb[14].mxu1 }
0x1065   : > { %v4395_v43 = vpop.f32.mrb[15].mxu1  ;;  %v2633_v44 = vsel %vm2632_vm4, %v2628_v42, -inf }
0x1066   : > { %2634 = vmax.xlane.f32.xlu0 %v2633_v44 }
0x10d7   : > { %v2800_v45 = vpop.f32.mrb[16].mxu1 }
0x10d8   : > { %v4409_v46 = vpop.f32.mrb[17].mxu1  ;;  %v2804_v47 = vsel %vm2632_vm4, %v2800_v45, -inf }
0x10d9   : > { %2805 = vmax.xlane.f32.xlu1 %v2804_v47 }
0x10ea   : > { %4769 = vrot.lane.b32.xlu1 %v5884_v26, %s5281_s25 }
0x10ee   : > { %3293 = vrot.lane.b32.xlu1 %v2368_v35, %s5283_s6 }
0x10f3   : > { %v2635_v48 = vpop.xlane.xlu0 %2634 }
0x10f4   : > { %v2636_v49 = vsub.f32 %v2628_v42, %v2635_v48 }
0x10f6   : > { %v2637_v50 = vmul.f32 1.442695, %v2636_v49 }
0x10f8   : > { %4806 = vpow2.f32 %v2637_v50 }
0x1102   : > { %v4807_v57 = vpop.eup %4806 }
0x1103   : > { %v2639_v58 = vsel %vm2632_vm4, %v4807_v57, 0.0 }
0x1104   : > { %2640 = vadd.xlane.f32.xlu0 %v2639_v58 }
0x1166   : > { %v2806_v60 = vpop.xlane.xlu1 %2805 }
0x1167   : > { %v2807_v61 = vsub.f32 %v2800_v45, %v2806_v60 }
0x1169   : > { %v2808_v62 = vmul.f32 1.442695, %v2807_v61 }
0x116a   : > { %v4770_v20 = vpop.permute.xlu1 %4769 }
0x116b   : > { %4808 = vpow2.f32 %v2808_v62  ;;  %v4772_v22 = vunpack.i.h.bf16 %v4770_v20  ;;  %v4771_v23 = vunpack.i.l.bf16 %v4770_v20  ;;  %v3217_v62 = vld [vmem:[%s6182_s28 + $0x10] sm:$0xff] }
0x116d   : > { %v4546_v25 = vpack.c.bf16 %v4772_v22, %v4771_v23 }
0x116e   : > { %v3294_v31 = vpop.permute.xlu1 %3293 }
0x1175   : > { %v4809_v63 = vpop.eup %4808 }
0x1176   : > { %v2810_v2 = vsel %vm2632_vm4, %v4809_v63, 0.0 }
0x1177   : > { %2811 = vadd.xlane.f32.xlu0 %v2810_v2 }
0x118d   : > { %4764 = vrot.lane.b32.xlu0 %v5916_v56, %s5280_s15  ;;  %s1097_s15 = scalar_lea.vmem [#allocation20], %s5695_s24 }
0x1191   : > { %v2641_v3 = vpop.xlane.xlu0 %2640  ;;  %3044 = vrot.lane.b32.xlu0 %v2368_v35, %s5281_s25 }
0x1192   : > { %4810 = vrcp.f32 %v2641_v3 }
0x1195   : > { %4774 = vrot.lane.b32.xlu0 %v5884_v26, %s5283_s6 }
0x119c   : > { %v4811_v4 = vpop.eup %4810 }
0x119d   : > { %v5932_v5 = vmul.f32 %v4811_v4, %v4807_v57 }
0x119f   : > { %4401 = vmatmul.mubr.msk.f32.vlgmr.msra.gmra.mrb[20].mxu0 %vm2632_vm4, %v5932_v5 }
0x11a0   : > { %4414 = vmatprep.mubr.msk.f32.mxu0 %vm5276_vm0, %v5277_v1 }
0x1204   : > { %v2812_v7 = vpop.xlane.xlu0 %2811 }
0x1205   : > { %4812 = vrcp.f32 %v2812_v7 }
0x1208   : > { %v4765_v10 = vpop.permute.xlu0 %4764 }
0x1209   : > { %v4767_v11 = vunpack.i.h.bf16 %v4765_v10  ;;  %v4766_v12 = vunpack.i.l.bf16 %v4765_v10 }
0x120b   : > { %v4542_v14 = vpack.c.bf16 %v4767_v11, %v4766_v12 }
0x120c   : > { %v3045_v21 = vpop.permute.xlu0 %3044 }
0x120d   : > { %4544 = vmatpush3.bf16.msk.msra.mxu0 %vm5919_vm7, %v4542_v14  ;;  %v3466_v14 = vld [vmem:[%s6182_s28 + $0x18] sm:$0xff] }
0x120e   : > { %4417 = vmatprep.subr.mxu0 %v5277_v1 }
0x120f   : > { %v4813_v15 = vpop.eup %4812 }
0x1210   : > { %v5943_v17 = vmul.f32 %v4813_v15, %v4809_v63  ;;  %v4775_v9 = vpop.permute.xlu0 %4774 }
0x1211   : > { %v4777_v28 = vunpack.i.h.bf16 %v4775_v9  ;;  %v4776_v29 = vunpack.i.l.bf16 %v4775_v9 }
0x1212   : > { %4415 = vmatmul.mubr.msk.f32.vlgmr.msra.gmra.mrb[22].mxu0 %vm2632_vm4, %v5943_v17  ;;  %v3043_v55 = vadd.f32 %v5943_v17, %v5932_v5 }
0x1213   : > { %4418 = vmatpush3.msra.mxu0 %v2896_v16  ;;  %4419 = vmatprep.mubr.msk.f32.mxu0 %vm5276_vm0, %v5277_v1  ;;  %v4554_v30 = vpack.c.bf16 %v4777_v28, %v4776_v29 }
0x1214   : > { %4545 = vmatprep.subr.bf16.mxu0 %v5275_v0 }
0x1272   : > { %v2717_v19 = vpop.f32.mrb[20].mxu0 }
0x1273   : > { %v4402_v13 = vpop.f32.mrb[21].mxu0  ;;  %4425 = vmatmul.mubr.msk.f32.vlgmr.msra.gmra.mrb[18].mxu1 %vm1288_vm2, %v2717_v19 }
0x1274   : > { %4438 = vmatprep.mubr.msk.f32.mxu1 %vm5276_vm0, %v5277_v1 }
0x12e5   : > { %v2892_v26 = vpop.f32.mrb[22].mxu0 }
0x12e6   : > { %v4416_v27 = vpop.f32.mrb[23].mxu0  ;;  %4420 = vmatmul.mubr.msk.f32.vlgmr.msra.gmra.mrb[24].mxu0 %vm1288_vm2, %v2892_v26 }
0x12e7   : > { %4548 = vmatpush3.bf16.xpose.msk.msra.mxu0 %vm5880_vm3, %v4546_v25  ;;  %4431 = vmatprep.mubr.msk.f32.mxu0 %vm5276_vm0, %v5277_v1 }
0x12e8   : > { %4553 = vmatprep.subr.bf16.mxu0 %v5275_v0 }
0x12ee   : > { %4432 = vmatmul.mubr.msk.f32.vlgmr.msra.gmra.mrb[26].mxu0 %vm1288_vm2, %v3045_v21 }
0x12ef   : > { %4556 = vmatpush3.bf16.xpose.msk.msra.mxu0 %vm5880_vm3, %v4554_v30  ;;  %4450 = vmatprep.mubr.msk.f32.mxu0 %vm5276_vm0, %v5277_v1  ;;  %v3581_v30 = vld [vmem:[#allocation17] sm:$0xff] }
0x12f0   : > { %4561 = vmatprep.subr.bf16.mxu0 %v5275_v0 }
0x12f6   : > { %4451 = vmatmul.mubr.msk.f32.vlgmr.msra.gmra.mrb[28].mxu0 %vm1288_vm2, %v3294_v31  ;;  %v3582_v31 = vld [vmem:[#allocation17 + $0x8] sm:$0xff] }
0x12f7   : > { %4473 = vmatprep.mubr.msk.f32.mxu0 %vm5276_vm0, %v5277_v1 }
0x1346   : > { %v3039_v32 = vpop.f32.mrb[18].mxu1 }
0x1347   : > { %v4426_v34 = vpop.f32.mrb[19].mxu1 }
0x1348   : > { %v3584_v34 = vld [vmem:[#allocation17 + $0x18] sm:$0xff] }
0x13b9   : > { %v2966_v35 = vpop.f32.mrb[24].mxu0 }
0x13ba   : > { %v5969_v36 = vadd.f32 %v3039_v32, %v2966_v35  ;;  %v4421_v33 = vpop.f32.mrb[25].mxu0  ;;  %v4562_v32 = vpack.c.bf16 %v3582_v31, %v3581_v30 }
0x13bc   : > { %4563 = vmatpush3.bf16.msra.mxu0 %v4562_v32 }
0x13bd   : > { %4564 = vmatprep.subr.bf16.mxu0 %v5275_v0 }
0x13c1   : > { %v3122_v37 = vpop.f32.mrb[26].mxu0 }
0x13c2   : > { %v4433_v24 = vpop.f32.mrb[27].mxu0  ;;  %v3126_v38 = vsel %vm2632_vm4, %v3122_v37, -inf }
0x13c3   : > { %3127 = vmax.xlane.f32.xlu0 %v3126_v38 }
0x13c9   : > { %v3371_v39 = vpop.f32.mrb[28].mxu0 }
0x13ca   : > { %v4452_v40 = vpop.f32.mrb[29].mxu0  ;;  %v3375_v50 = vsel %vm2632_vm4, %v3371_v39, -inf }
0x13d9   : > { %4779 = vrot.lane.b32.xlu0 %v5916_v56, %s5281_s25  ;;  %s6183_s25 = sld [smem:[#allocation45_spill]] }
0x13df   : > { %v4160_v22 = vld [vmem:[%s6183_s25] ss:$0 sm:$0xff]  ;;  %s3819_s25 = sshll.u32 %s1097_s15, 4  ;;  %s3820_s25 = int_to_ptr.vmem [resolvable:$true] %s3819_s25 }
0x1450   : > { %v3128_v41 = vpop.xlane.xlu0 %3127 }
0x1451   : > { %v3129_v42 = vsub.f32 %v3122_v37, %v3128_v41 }
0x1453   : > { %v3130_v43 = vmul.f32 1.442695, %v3129_v42 }
0x1454   : > { %v4780_v44 = vpop.permute.xlu0 %4779 }
0x1455   : > { %4814 = vpow2.f32 %v3130_v43  ;;  %v4782_v45 = vunpack.i.h.bf16 %v4780_v44  ;;  %v4781_v46 = vunpack.i.l.bf16 %v4780_v44 }
0x1457   : > { %v4550_v47 = vpack.c.bf16 %v4782_v45, %v4781_v46 }
0x1459   : > { %4552 = vmatpush3.bf16.msk.msra.mxu1 %vm5919_vm7, %v4550_v47  ;;  %v4161_v47 = vld [vmem:[%s6185_s17] ss:$0 sm:$0xff]  ;;  %s3793_s17 = scalar_lea.sflag [#allocation21], %s5692_s30 }
0x145a   : > { %4441 = vmatprep.subr.mxu1 %v5277_v1 }
0x145f   : > { %v4815_v48 = vpop.eup %4814 }
0x1460   : > { %v3132_v49 = vsel %vm2632_vm4, %v4815_v48, 0.0 }
0x1461   : > { %3133 = vadd.xlane.f32.xlu1 %v3132_v49  ;;  %v4162_v49 = vld [vmem:[%s6186_s19] ss:$0 sm:$0xff]  ;;  %s5110_s19 = scalar_lea.vmem %s3820_s25, 128 }
0x1462   : > { %p5111_p12 = scmp.ne.s32.totalorder %s3820_s25, %s5110_s19 }
0x1464   : > { %p5112_p8 = pnand %p5111_p12, %p6189_p7 }
0x1465   : > { %3376 = vmax.xlane.f32.xlu1 %v3375_v50 }
0x1466   : > { %p5113_p9 = pneg %p5112_p8 }
0x14ee   : > { %v3134_v51 = vpop.xlane.xlu1 %3133 }
0x14ef   : > { %4816 = vrcp.f32 %v3134_v51 }
0x14f2   : > { %v3377_v52 = vpop.xlane.xlu1 %3376 }
0x14f3   : > { %v3378_v53 = vsub.f32 %v3371_v39, %v3377_v52 }
0x14f5   : > { %v3379_v54 = vmul.f32 1.442695, %v3378_v53 }
0x14f7   : > { %4818 = vpow2.f32 %v3379_v54 }
0x14f9   : > { %v4817_v8 = vpop.eup %4816 }
0x14fa   : > { %v3136_v57 = vmul.f32 %v4817_v8, %v4815_v48  ;;  %v4163_v8 = vld [vmem:[%s6187_s22] ss:$0 sm:$0xff]  ;;  %s5286_s22 = smov [#allocation20]  }
0x14fc   : > { %v3292_v58 = vadd.f32 %v3136_v57, %v3043_v55  ;;  %4439 = vmatmul.mubr.msk.f32.vlgmr.msra.gmra.mrb[20].mxu1 %vm2632_vm4, %v3136_v57 }
0x14fd   : > { %4443 = vmatprep.mubr.msk.f32.mxu1 %vm5276_vm0, %v5277_v1  ;;  %4442 = vmatpush3.msra.mxu1 %v3217_v62 }
0x14fe   : > { %4557 = vmatprep.subr.bf16.mxu1 %v5275_v0 }
0x1501   : > { %v4819_v60 = vpop.eup %4818 }
0x1502   : > { %v3381_v61 = vsel %vm2632_vm4, %v4819_v60, 0.0 }
0x1503   : > { %3382 = vadd.xlane.f32.xlu1 %v3381_v61 }
0x1514   : > { %4784 = vrot.lane.b32.xlu1 %v5916_v56, %s5283_s6  ;;  %s6184_s6 = sld [smem:[#allocation50_spill]] }
0x151a   : > { %v3667_v33 = vld [vmem:[%s6184_s6 + $0x8] sm:$0xff]  ;;  %v3668_v37 = vld [vmem:[%s6184_s6 + $0x10] sm:$0xff]  ;;  %v3669_v38 = vld [vmem:[%s6184_s6 + $0x18] sm:$0xff] }
0x151b   : > { %v4571_v39 = vpack.c.bf16 %v3669_v38, %v3668_v37  ;;  %v3670_v40 = vld [vmem:[%s6184_s6 + $0x20] sm:$0xff]  ;;  %v3671_v41 = vld [vmem:[%s6184_s6 + $0x28] sm:$0xff]  ;;  %v3672_v52 = vld [vmem:[%s6184_s6 + $0x30] sm:$0xff] }
0x151c   : > { %v4574_v42 = vpack.c.bf16 %v3671_v41, %v3670_v40  ;;  %v3673_v53 = vld [vmem:[%s6184_s6 + $0x38] sm:$0xff] }
0x151d   : > { %v4577_v54 = vpack.c.bf16 %v3673_v53, %v3672_v52 }
0x1590   : > { %v3383_v63 = vpop.xlane.xlu1 %3382 }
0x1591   : > { %4820 = vrcp.f32 %v3383_v63 }
0x1594   : > { %v4785_v6 = vpop.permute.xlu1 %4784 }
0x1595   : > { %v4787_v7 = vunpack.i.h.bf16 %v4785_v6  ;;  %v4786_v10 = vunpack.i.l.bf16 %v4785_v6 }
0x1597   : > { %v4558_v11 = vpack.c.bf16 %v4787_v7, %v4786_v10 }
0x159b   : > { %v4821_v2 = vpop.eup %4820 }
0x159c   : > { %v3385_v3 = vmul.f32 %v4821_v2, %v4819_v60  ;;  %v4165_v60 = vld [vmem:[%s6188_s2] ss:$0 sm:$0xff]  ;;  %s5114_s2 = sshll.u32 %s5286_s22, 4  ;;  %s5115_s2 = int_to_ptr.vmem [resolvable:$false] %s5114_s2 }
0x159d   : > { %s5116_s5 = scalar_lea.vmem %s5115_s2, 256  ;;  %p5117_p3 = scmp.lt.s32.totalorder %s3820_s25, %s5115_s2 }
0x159e   : > { %v3541_v4 = vadd.f32 %v3385_v3, %v3292_v58  ;;  %p5118_p0 = scmp.lt.s32.totalorder %s5116_s5, %s5110_s19 }
0x15a0   : > { %v3542_v5 = vmul.f32 0.25, %v3541_v4  ;;  %p5119_p2 = por %p5118_p0, %p5117_p3 }
0x15a2   : > { %3786 = vst.msk [vmem:[%s1097_s15] sm:$0xff] %vm2632_vm4, %v3542_v5  ;;  %p5120_p10 = pnand %p5119_p2, %p5113_p9 }
0x15cf   : > { %v3213_v56 = vpop.f32.mrb[20].mxu1 }
0x15d0   : > { %v4440_v12 = vpop.f32.mrb[21].mxu1  ;;  %4444 = vmatmul.mubr.msk.f32.vlgmr.msra.gmra.mrb[22].mxu1 %vm1288_vm2, %v3213_v56 }
0x15d1   : > { %4560 = vmatpush3.bf16.msk.msra.mxu1 %vm5919_vm7, %v4558_v11  ;;  %4457 = vmatprep.mubr.msk.f32.mxu1 %vm5276_vm0, %v5277_v1 }
0x15d2   : > { %4460 = vmatprep.subr.mxu1 %v5277_v1 }
0x15d4   : > { %4458 = vmatmul.mubr.msk.f32.vlgmr.msra.gmra.mrb[24].mxu1 %vm2632_vm4, %v3385_v3 }
0x15d5   : > { %4462 = vmatprep.mubr.msk.f32.mxu1 %vm5276_vm0, %v5277_v1  ;;  %4461 = vmatpush3.msra.mxu1 %v3466_v14 }
0x15d6   : > { %4567 = vmatprep.subr.bf16.mxu1 %v5275_v0 }
0x16a3   : > { %v3287_v15 = vpop.f32.mrb[22].mxu1 }
0x16a4   : > { %v3291_v17 = vadd.f32 %v3287_v15, %v5969_v36  ;;  %v4445_v59 = vpop.f32.mrb[23].mxu1  ;;  %v3666_v36 = vld [vmem:[%s6184_s6] sm:$0xff] }
0x16a5   : > { %v4568_v24 = vpack.c.bf16 %v3667_v33, %v3666_v36 }
0x16a7   : > { %v3462_v16 = vpop.f32.mrb[24].mxu1 }
0x16a8   : > { %v4459_v19 = vpop.f32.mrb[25].mxu1  ;;  %4463 = vmatmul.mubr.msk.f32.vlgmr.msra.gmra.mrb[26].mxu1 %vm1288_vm2, %v3462_v16 }
0x16a9   : > { %4492 = vmatprep.mubr.msk.f32.mxu1 %vm5276_vm0, %v5277_v1  ;;  %4569 = vmatpush3.bf16.msra.mxu1 %v4568_v24 }
0x16aa   : > { %4570 = vmatprep.subr.bf16.mxu1 %v5275_v0 }
0x16ad   : > { %4572 = vmatpush3.bf16.msra.mxu1 %v4571_v39 }
0x16ae   : > { %4573 = vmatprep.subr.bf16.mxu1 %v5275_v0 }
0x16b1   : > { %4575 = vmatpush3.bf16.msra.mxu1 %v4574_v42 }
0x16b2   : > { %4576 = vmatprep.subr.bf16.mxu1 %v5275_v0 }
0x16b5   : > { %4578 = vmatpush3.bf16.msra.mxu1 %v4577_v54 }
0x177b   : > { %v3536_v13 = vpop.f32.mrb[26].mxu1 }
0x177c   : > { %v3540_v20 = vadd.f32 %v3536_v13, %v3291_v17  ;;  %v4464_v21 = vpop.f32.mrb[27].mxu1 }
0x177e   : > { %v3543_v23 = vadd.f32 %v3540_v20, %v5872_v18  ;;  %v3583_v18 = vld [vmem:[#allocation17 + $0x10] sm:$0xff] }
0x177f   : > { %v4565_v35 = vpack.c.bf16 %v3584_v34, %v3583_v18 }
0x1780   : > { %v3551_v25 = vadd.f32 %v4160_v22, %v3543_v23 }
0x1781   : > { %4566 = vmatpush3.bf16.msra.mxu0 %v4565_v35 }
0x1782   : > { %v3554_v26 = vsel %vm1126_vm1, %v3551_v25, 0.0 }
0x1783   : > { %3555 = vadd.xlane.f32.xlu0 %v3554_v26 }
0x1810   : > { %v3556_v9 = vpop.xlane.xlu0 %3555 }
0x1811   : > { %v3557_v27 = vmul.f32 0.03125, %v3556_v9 }
0x1813   : > { %v3558_v28 = vsub.f32 %v3551_v25, %v3557_v27 }
0x1815   : > { %v3559_v29 = vmul.f32 %v3558_v28, %v3558_v28 }
0x1817   : > { %v3560_v1 = vsel %vm1126_vm1, %v3559_v29, 0.0 }
0x1818   : > { %3561 = vadd.xlane.f32.xlu1 %v3560_v1 }
0x18a5   : > { %v3562_v43 = vpop.xlane.xlu1 %3561 }
0x18a6   : > { %v3563_v44 = vmul.f32 0.03125, %v3562_v43 }
0x18a8   : > { %v3564_v45 = vadd.f32 1e-05, %v3563_v44 }
0x18aa   : > { %4822 = vrsqrt.f32 %v3564_v45 }
0x18b4   : > { %v4823_v46 = vpop.eup %4822 }
0x18b5   : > { %v3566_v48 = vmul.f32 %v4823_v46, %v3558_v28 }
0x18b7   : > { %v3573_v50 = vmul.f32 %v4161_v47, %v3566_v48 }
0x18b9   : > { %v3580_v51 = vadd.f32 %v4162_v49, %v3573_v50 }
0x18bb   : > { %4474 = vmatmul.mubr.msk.f32.vlgmr.msra.gmra.mrb[30].mxu0 %vm1126_vm1, %v3580_v51 }
0x198e   : > { %v3661_v0 = vpop.f32.mrb[30].mxu0 }
0x198f   : > { %v3662_v55 = vadd.f32 %v4163_v8, %v3661_v0  ;;  %v4475_v57 = vpop.f32.mrb[31].mxu0 }
0x1991   : > { %v3665_v58 = vmax.f32 %v3662_v55, 0.0 }
0x1993   : > { %4493 = vmatmul.mubr.msk.f32.vlgmr.msra.gmra.mrb[28].mxu1 %vm3681_vm8, %v3665_v58 }
0x1a66   : > { %v3751_v61 = vpop.f32.mrb[28].mxu1 }
0x1a67   : > { %v3752_v62 = vadd.f32 %v4165_v60, %v3751_v61  ;;  %v4494_v63 = vpop.f32.mrb[29].mxu1 }
0x1a69   : > { %v3755_v2 = vadd.f32 %v3752_v62, %v3580_v51 }
0x1a6b   : > { %v3758_v3 = vsel %vm1126_vm1, %v3755_v2, 0.0 }
0x1a6c   : > { %3759 = vadd.xlane.f32.xlu0 %v3758_v3 }
0x1af9   : > { %v3760_v4 = vpop.xlane.xlu0 %3759 }
0x1afa   : > { %v3761_v5 = vmul.f32 0.03125, %v3760_v4 }
0x1afc   : > { %v3762_v6 = vsub.f32 %v3755_v2, %v3761_v5 }
0x1afe   : > { %v3763_v7 = vmul.f32 %v3762_v6, %v3762_v6 }
0x1b00   : > { %v3764_v10 = vsel %vm1126_vm1, %v3763_v7, 0.0 }
0x1b01   : > { %3765 = vadd.xlane.f32.xlu0 %v3764_v10 }
0x1b02   : > { %5123 = shalt.err (!%p5120_p10)
}
0x1b03   : > { %s5124_s15 = scalar_lea.hbm %s6035_s27, 128  ;;  %s5128_s22 = scalar_lea.hbm %s5441_s4, 256 }
0x1b04   : > { %p5125_p11 = scmp.ne.s32.totalorder %s6035_s27, %s5124_s15  ;;  %p5129_p4 = scmp.lt.u32.totalorder %s6035_s27, %s5441_s4 }
0x1b05   : > { %p5130_p5 = scmp.lt.u32.totalorder %s5128_s22, %s5124_s15  ;;  %p5132_p12 = scmp.lt.u32.totalorder %s5124_s15, %s6035_s27 }
0x1b06   : > { %p5126_p13 = pnand %p5125_p11, %p6189_p7 }
0x1b07   : > { %p5131_p6 = por %p5130_p5, %p5129_p4 }
0x1b08   : > { %p5127_p1 = pneg %p5126_p13 }
0x1b09   : > { %p5133_p8 = por %p5132_p12, %p5131_p6 }
0x1b0b   : > { %p5134_p9 = pnand %p5133_p8, %p5127_p1 }
0x1b0d   : > { %5137 = shalt.err (!%p5134_p9)
}
0x1b0e   : > { %s6190_s5 = sld [smem:[#allocation52_spill]]  ;;  %s6191_s19 = sld [smem:[#allocation53_spill]]  ;;  %v4167_v15 = vld [vmem:[%s5426_s9] ss:$0 sm:$0xff] }
0x1b0f   : > { %4616 = dma.vmem_to_hbm [thread:$0]  (%p6189_p7), %s3820_s25, 128, %s6035_s27, %s3793_s17  }
0x1b10   : > { %s1090_s2 = scalar_lea.vmem [#allocation19], %s5695_s24  ;;  %s3788_s27 = scalar_lea.sflag [#allocation4], %s5692_s30 }
0x1b11   : > { %s3806_s15 = sshll.u32 %s1090_s2, 4  ;;  %s5287_s24 = smov [#allocation19]   ;;  %s6061_s15 = int_to_ptr.vmem [resolvable:$true] %s3806_s15 }
0x1b12   : > { %s5138_s25 = scalar_lea.vmem %s6061_s15, 128  ;;  %s5142_s17 = sshll.u32 %s5287_s24, 4  ;;  %s5143_s17 = int_to_ptr.vmem [resolvable:$false] %s5142_s17 }
0x1b13   : > { %p5139_p3 = scmp.ne.s32.totalorder %s6061_s15, %s5138_s25  ;;  %p5145_p10 = scmp.lt.s32.totalorder %s6061_s15, %s5143_s17 }
0x1b14   : > { %v4168_v59 = vld [vmem:[%s6190_s5] ss:$0 sm:$0xff]  ;;  %s6059_s22 = scalar_lea.hbm %s6191_s19, %s4171_s3  ;;  %s5144_s5 = scalar_lea.vmem %s5143_s17, 256 }
0x1b15   : > { %p5140_p0 = pnand %p5139_p3, %p6189_p7  ;;  %p5146_p11 = scmp.lt.s32.totalorder %s5144_s5, %s5138_s25 }
0x1b17   : > { %p5141_p2 = pneg %p5140_p0  ;;  %p5147_p13 = por %p5146_p11, %p5145_p10 }
0x1b19   : > { %p5148_p1 = pnand %p5147_p13, %p5141_p2 }
0x1b8e   : > { %v3766_v11 = vpop.xlane.xlu0 %3765 }
0x1b8f   : > { %v3767_v56 = vmul.f32 0.03125, %v3766_v11 }
0x1b91   : > { %v3768_v12 = vadd.f32 1e-05, %v3767_v56 }
0x1b93   : > { %4824 = vrsqrt.f32 %v3768_v12 }
0x1b9d   : > { %v4825_v14 = vpop.eup %4824 }
0x1b9e   : > { %v3770_v17 = vmul.f32 %v4825_v14, %v3762_v6 }
0x1ba0   : > { %v3777_v16 = vmul.f32 %v4167_v15, %v3770_v17 }
0x1ba2   : > { %v3784_v19 = vadd.f32 %v4168_v59, %v3777_v16 }
0x1ba4   : > { %3785 = vst.msk [vmem:[%s1090_s2] sm:$0xff] %vm1126_vm1, %v3784_v19 }
0x1ba5   : > { %5151 = shalt.err (!%p5148_p1)
}
0x1ba6   : > { %s5152_s18 = scalar_lea.hbm %s6059_s22, 128  ;;  %s5156_s30 = scalar_lea.hbm %s6191_s19, 256 }
0x1ba7   : > { %p5153_p4 = scmp.ne.s32.totalorder %s6059_s22, %s5152_s18  ;;  %p5157_p12 = scmp.lt.u32.totalorder %s6059_s22, %s6191_s19 }
0x1ba8   : > { %p5158_p8 = scmp.lt.u32.totalorder %s5156_s30, %s5152_s18  ;;  %p5160_p3 = scmp.lt.u32.totalorder %s5152_s18, %s6059_s22 }
0x1ba9   : > { %p5154_p5 = pnand %p5153_p4, %p6189_p7 }
0x1baa   : > { %p5159_p9 = por %p5158_p8, %p5157_p12 }
0x1bab   : > { %p5155_p6 = pneg %p5154_p5 }
0x1bac   : > { %p5161_p0 = por %p5160_p3, %p5159_p9 }
0x1bae   : > { %p5162_p2 = pnand %p5161_p0, %p5155_p6 }
0x1bb0   : > { %5165 = shalt.err (!%p5162_p2)
}
0x1bb1   : > { %4615 = dma.vmem_to_hbm [thread:$0]  (%p6189_p7), %s6061_s15, 128, %s6059_s22, %s3788_s27  }
0x1bb2 PF: > { %s3831_s3 = sand.u32 1, %s5220_s7   ;;  %p6192_p10 = scmp.ne.s32.totalorder %s6158_s23, 0 }
0x1bb3   : > { %p6193_p11 = scmp.ge.s32.totalorder %s5232_s0, 2  ;;  %s3832_s2 = scalar_lea.sflag [#allocation4], %s3831_s3 }
0x1bb5   : > { %p4652_p13 = pnand %p6193_p11, %p6192_p10 }
0x1bb7   : > { %5211 = dma.done.wait (!%p4652_p13), %s3832_s2, 128  }
0x1bb8   : > { %5213 = vsyncadd (!%p4652_p13), %s3832_s2, 4294967168  ;;  %s3841_s25 = scalar_lea.sflag [#allocation21], %s3831_s3 }
0x1bb9   : > { %5215 = dma.done.wait (!%p4652_p13), %s3841_s25, 128  }
0x1bba   : > { %5217 = vsyncadd (!%p4652_p13), %s3841_s25, 4294967168  ;;  %p83_p7 = scmp.ge.s32.totalorder %s5597_s16, 4   ;;  %s6194_s7 = smov %s5224_s10 }
0x1bbb   : > { %s6195_s10 = smov %s5228_s11  ;;  %s6196_s11 = smov %s5608_s26 }
0x1bbc   : > { %s6197_s0 = smov %s5597_s16  ;;  %85 = sbr.rel (!%p83_p7) target bundleno = 76 (0x4c), region = 274 }
0x1bc3   :  { %3846 = vsyncpa [#allocation3], 1 }
0x1bc4   :  { %3848 = vsyncpa [#allocation3 + $0x1], 1 }
0x1bc5   :  { %3849 = vsyncpa [#allocation6], 1 }
0x1bc6   :  { %3851 = vsyncpa [#allocation6 + $0x1], 1 }
0x1bc7   :  { %3852 = vsyncpa [#allocation9], 1 }
0x1bc8   :  { %3853 = vsyncpa [#allocation12], 1 }
0x1bc9   :  { %3854 = vsyncpa [#allocation15], 1 }
0x1bca   :  { %3855 = vsyncpa [#allocation18], 1 }
0x1bcb   :  { %3856 = vsyncpa [#allocation4], 1 }
0x1bcc   :  { %3858 = vsyncpa [#allocation4 + $0x1], 1 }
0x1bcd   :  { %3859 = vsyncpa [#allocation21], 1 }
0x1bce   :  { %3861 = vsyncpa [#allocation21 + $0x1], 1 }

</bundles_post_ra>
